<compile_context>
chip_gen: v6e
topology: v6e:2x2x1
jax: 0.10.0
libtpu: 0.0.40
codegen_flags: <defaults>
</compile_context>

<pallas_src>
import functools
import math

import jax
import jax.numpy as jnp
from jax import lax
from jax.experimental import pallas as pl
from jax.experimental.pallas import tpu as pltpu


# --------------------------------------------------------------------------
# Small helpers
# --------------------------------------------------------------------------
@functools.lru_cache(maxsize=None)
def _vmem_limit_bytes():
    """Generation-aware scoped-VMEM cap: ~3/4 of physical, capped at 96 MiB.

    v5e/v6e (128 MiB physical) -> 96 MiB; v7x (64 MiB physical) -> 48 MiB.
    Falls back to 48 MiB (safe on every generation) if the query fails.
    """
    try:
        cap = int(pltpu.get_tpu_info().vmem_capacity_bytes)
    except Exception:
        cap = 64 * 1024 * 1024
    return int(max(32 * 1024 * 1024, min(cap * 3 // 4, 96 * 1024 * 1024)))


def _sublane_step(dtype):
    """Minimum second-to-last tile dim for dtype: 8 (f32), 16 (bf16), 32 (i8)."""
    return max(8, 32 // jnp.dtype(dtype).itemsize)


def _pick_tile(dim, target, step):
    """Largest multiple of `step` that is <= target and divides dim, else dim."""
    if dim <= target:
        return dim
    t = (target // step) * step
    while t >= step:
        if dim % t == 0:
            return t
        t -= step
    return dim


# --------------------------------------------------------------------------
# Tiled linear:  y = x @ w_t + b   (w_t already stored as (Din, Dout))
# --------------------------------------------------------------------------
def _linear_kernel(x_ref, w_ref, b_ref, o_ref, acc_ref):
    k = pl.program_id(2)

    @pl.when(k == 0)
    def _():
        acc_ref[...] = jnp.zeros_like(acc_ref)

    acc_ref[...] += jnp.dot(
        x_ref[...], w_ref[...], preferred_element_type=jnp.float32
    )

    @pl.when(k == pl.num_programs(2) - 1)
    def _():
        o_ref[...] = (acc_ref[...] + b_ref[...].astype(jnp.float32)).astype(
            o_ref.dtype
        )


def _linear(x2d, w_t, b, *, tm=512, tn=512, tk=1024):
    M, K = x2d.shape
    K2, N = w_t.shape
    assert K == K2, "weight must be pre-transposed to (Din, Dout)"
    tm = _pick_tile(M, tm, _sublane_step(x2d.dtype))
    tn = _pick_tile(N, tn, 128)
    tk = _pick_tile(K, tk, 128)
    grid = (M // tm, N // tn, K // tk)

    itemsize = x2d.dtype.itemsize
    # Account for re-streaming: activations are re-read per output-N tile and
    # weights per output-M tile.
    cost = pl.CostEstimate(
        flops=2 * M * N * K,
        transcendentals=0,
        bytes_accessed=int(
            (M * K * grid[1] + K * N * grid[0] + M * N + N) * itemsize
        ),
    )

    return pl.pallas_call(
        _linear_kernel,
        out_shape=jax.ShapeDtypeStruct((M, N), x2d.dtype),
        grid_spec=pltpu.PrefetchScalarGridSpec(
            num_scalar_prefetch=0,
            grid=grid,
            in_specs=[
                pl.BlockSpec((tm, tk), lambda i, j, k: (i, k)),
                pl.BlockSpec((tk, tn), lambda i, j, k: (k, j)),
                pl.BlockSpec((1, tn), lambda i, j, k: (0, j)),
            ],
            out_specs=pl.BlockSpec((tm, tn), lambda i, j, k: (i, j)),
            scratch_shapes=[pltpu.VMEM((tm, tn), jnp.float32)],
        ),
        compiler_params=pltpu.CompilerParams(
            dimension_semantics=("parallel", "parallel", "arbitrary"),
            vmem_limit_bytes=_vmem_limit_bytes(),
        ),
        cost_estimate=cost,
    )(x2d, w_t, b.reshape(1, N))


# --------------------------------------------------------------------------
# Flash-style scaled-dot-product attention (all heads per grid step).
# Inputs:  q, k, v as (B, H, S, Dh)  (scale already folded into q's weights).
# Output:  (B, Sq, H*Dh)  -- lane-dense, head-merge fused into the kernel.
# --------------------------------------------------------------------------
def _flash_attention_kernel(q_ref, k_ref, v_ref, o_ref, m_sc, l_sc, acc_sc):
    ki = pl.program_id(2)
    H = q_ref.shape[1]
    Dh = q_ref.shape[3]

    @pl.when(ki == 0)
    def _():
        m_sc[...] = jnp.full_like(m_sc, -jnp.inf)
        l_sc[...] = jnp.zeros_like(l_sc)
        acc_sc[...] = jnp.zeros_like(acc_sc)

    q = q_ref[0]                               # (H, tq, Dh); 1/sqrt(Dh) pre-folded
    k = k_ref[0]                               # (H, tkv, Dh)
    v = v_ref[0]                               # (H, tkv, Dh)

    # Batched-over-heads q.k^T; contract last dims so no K-tile transpose.
    s = lax.dot_general(
        q, k,
        dimension_numbers=(((2,), (2,)), ((0,), (0,))),
        preferred_element_type=jnp.float32,
    )                                          # (H, tq, tkv), f32

    m_prev = m_sc[...]
    m_new = jnp.maximum(m_prev, jnp.max(s, axis=-1, keepdims=True))
    alpha = jnp.exp(m_prev - m_new)
    p = jnp.exp(s - m_new)

    l_sc[...] = alpha * l_sc[...] + jnp.sum(p, axis=-1, keepdims=True)
    acc_sc[...] = alpha * acc_sc[...] + lax.dot_general(
        p.astype(v.dtype), v,
        dimension_numbers=(((2,), (1,)), ((0,), (0,))),
        preferred_element_type=jnp.float32,
    )
    m_sc[...] = m_new

    @pl.when(ki == pl.num_programs(2) - 1)
    def _():
        # Deferred normalization, then fuse the head-merge: write each head's
        # (tq, Dh) slab into its static lane slice of the lane-dense
        # (tq, H*Dh) output block.  Runs once per q tile, on the last KV step.
        inv_l = pl.reciprocal(l_sc[...], approx=False)          # (H, tq, 1)
        merged = (acc_sc[...] * inv_l).astype(o_ref.dtype)      # (H, tq, Dh)
        for h in range(H):                                      # static unroll
            o_ref[0, :, h * Dh:(h + 1) * Dh] = merged[h]


def _flash_attention(q, k, v, *, tq=256, tkv=256):
    B, H, Sq, Dh = q.shape
    Sk = k.shape[2]
    D = H * Dh
    step = _sublane_step(q.dtype)
    tq = _pick_tile(Sq, tq, step)
    tkv = _pick_tile(Sk, tkv, step)
    isz = q.dtype.itemsize

    # Guard the all-heads-per-step working set against VMEM (notably v7x with
    # 64 MiB physical): shrink tkv first, then tq, until it fits the budget.
    def footprint(tq_, tkv_):
        io = 2 * (tq_ + 2 * tkv_) * H * Dh * isz        # double-buffered q,k,v
        io += 2 * tq_ * D * isz                         # double-buffered output
        scr = (tq_ * H * Dh + 2 * tq_ * H) * 4          # f32 acc + m + l scratch
        scores = H * tq_ * tkv_ * 4                     # live f32 score tile
        return io + scr + scores

    budget = int(_vmem_limit_bytes() * 0.6)
    while footprint(tq, tkv) > budget:
        new_tkv = _pick_tile(Sk, max(step, tkv // 2), step)
        if new_tkv < tkv:
            tkv = new_tkv
            continue
        new_tq = _pick_tile(Sq, max(step, tq // 2), step)
        if new_tq < tq:
            tq = new_tq
            continue
        break

    grid = (B, Sq // tq, Sk // tkv)

    cost = pl.CostEstimate(
        flops=4 * B * H * Sq * Sk * Dh,
        transcendentals=B * H * Sq * Sk,
        bytes_accessed=int(
            (B * H * Sq * Dh                       # q read once
             + 2 * B * H * Sk * Dh * grid[1]       # k, v re-streamed per q tile
             + B * Sq * D) * isz                   # output write
        ),
    )

    return pl.pallas_call(
        _flash_attention_kernel,
        out_shape=jax.ShapeDtypeStruct((B, Sq, D), q.dtype),
        grid_spec=pltpu.PrefetchScalarGridSpec(
            num_scalar_prefetch=0,
            grid=grid,
            in_specs=[
                pl.BlockSpec((1, H, tq, Dh), lambda b, qi, ki: (b, 0, qi, 0)),
                pl.BlockSpec((1, H, tkv, Dh), lambda b, qi, ki: (b, 0, ki, 0)),
                pl.BlockSpec((1, H, tkv, Dh), lambda b, qi, ki: (b, 0, ki, 0)),
            ],
            out_specs=pl.BlockSpec((1, tq, D), lambda b, qi, ki: (b, qi, 0)),
            scratch_shapes=[
                pltpu.VMEM((H, tq, 1), jnp.float32),    # running max
                pltpu.VMEM((H, tq, 1), jnp.float32),    # running sum
                pltpu.VMEM((H, tq, Dh), jnp.float32),   # output accumulator
            ],
        ),
        compiler_params=pltpu.CompilerParams(
            dimension_semantics=("parallel", "parallel", "arbitrary"),
            vmem_limit_bytes=_vmem_limit_bytes(),
        ),
        cost_estimate=cost,
    )(q, k, v)


# --------------------------------------------------------------------------
# MultiHeadAttention forward
# --------------------------------------------------------------------------
def multi_head_attention(params, queries, keys, values, num_heads, mask=None):
    """Forward pass of the PyTorch MultiHeadAttention module (mask=None path).

    `params` must be the kernel-layout params from `prepare_params`:
    `w{q,k,v,o}_t` of shape (Din, Dout) with 1/sqrt(Dh) folded into wq/bq,
    plus biases `b{q,k,v,o}`.
    """
    if mask is not None:
        # TODO(synk): the optional attention mask is not wired into the flash
        # kernel; only the mask=None path of the PyTorch module is implemented.
        raise NotImplementedError("mask is not supported by the Pallas kernel")

    B, Sq, D = queries.shape
    H = num_heads
    Dh = D // H

    def proj(x, w_t, b):
        b_, s_, _ = x.shape
        y = _linear(x.reshape(b_ * s_, D), w_t, b)
        # (B, S, H, Dh) -> (B, H, S, Dh): same as .view(...).transpose(1, 2).
        # TODO(synk): these head-split transposes are still XLA HBM passes;
        # fusing them needs an in-kernel (tq,H,Dh)->(H,tq,Dh) relayout which we
        # avoid for lowering safety.  The head-MERGE transpose after attention
        # is fused into the flash kernel's lane-dense output instead.
        return y.reshape(b_, s_, H, Dh).transpose(0, 2, 1, 3)

    pq = proj(queries, params["wq_t"], params["bq"])   # scale pre-folded into wq/bq
    pk = proj(keys, params["wk_t"], params["bk"])
    pv = proj(values, params["wv_t"], params["bv"])

    attn = _flash_attention(pq, pk, pv)                # (B, Sq, D), lane-dense
    out = _linear(attn.reshape(B * Sq, D), params["wo_t"], params["bo"])
    return out.reshape(B, Sq, D)


# --------------------------------------------------------------------------
# Parameters
# --------------------------------------------------------------------------
def init_params(key, model_dim):
    """PyTorch nn.Linear default init: U(-1/sqrt(in), +1/sqrt(in)), (Dout, Din)."""
    bound = 1.0 / math.sqrt(model_dim)
    names = ["q", "k", "v", "o"]
    keys = jax.random.split(key, 2 * len(names))
    params = {}
    for i, n in enumerate(names):
        params[f"w{n}"] = jax.random.uniform(
            keys[2 * i], (model_dim, model_dim), jnp.float32, -bound, bound
        )
        params[f"b{n}"] = jax.random.uniform(
            keys[2 * i + 1], (model_dim,), jnp.float32, -bound, bound
        )
    return params


def prepare_params(params, num_heads):
    """One-time layout prep: pre-transpose PyTorch (Dout, Din) weights to
    (Din, Dout) and fold the 1/sqrt(Dh) attention scale into wq/bq so the
    kernels never see a per-call transpose or a per-step scale multiply."""
    model_dim = params["wq"].shape[0]
    scale = 1.0 / math.sqrt(model_dim // num_heads)
    return {
        "wq_t": (params["wq"] * scale).T,
        "bq": params["bq"] * scale,
        "wk_t": params["wk"].T,
        "bk": params["bk"],
        "wv_t": params["wv"].T,
        "bv": params["bv"],
        "wo_t": params["wo"].T,
        "bo": params["bo"],
    }


# --------------------------------------------------------------------------
# Pure-JAX reference (mirrors the PyTorch module, mask=None)
# --------------------------------------------------------------------------
def reference_mha(params, queries, keys, values, num_heads):
    B, Sq, D = queries.shape
    Dh = D // num_heads

    def proj(x, w, b):
        y = x @ w.T + b
        return y.reshape(B, -1, num_heads, Dh).transpose(0, 2, 1, 3)

    pq = proj(queries, params["wq"], params["bq"])
    pk = proj(keys, params["wk"], params["bk"])
    pv = proj(values, params["wv"], params["bv"])
    s = jnp.einsum("bhqd,bhkd->bhqk", pq, pk) / math.sqrt(Dh)
    w = jax.nn.softmax(s, axis=-1)
    attn = jnp.einsum("bhqk,bhkd->bhqd", w, pv)
    attn = attn.transpose(0, 2, 1, 3).reshape(B, Sq, D)
    return attn @ params["wo"].T + params["bo"]


if __name__ == "__main__":
    root = jax.random.PRNGKey(0)
    kp, kq, kk, kv, kx, kw, kb = jax.random.split(root, 7)

    # ---- Test 1: small MHA (single KV step / single K step) ----------------
    B, S, D, H = 2, 8, 256, 4  # batch, seq, model_dim, heads (Dh = 64)
    torch_params = init_params(kp, D)
    kparams = prepare_params(torch_params, H)  # one-time transpose + scale fold

    queries = jax.random.normal(kq, (B, S, D), jnp.float32)
    keys = jax.random.normal(kk, (B, S, D), jnp.float32)
    values = jax.random.normal(kv, (B, S, D), jnp.float32)

    fwd = jax.jit(functools.partial(multi_head_attention, num_heads=H))
    out = jax.block_until_ready(fwd(kparams, queries, keys, values))
    ref = reference_mha(torch_params, queries, keys, values, H)
    assert out.shape == (B, S, D)
    assert jnp.allclose(out, ref, rtol=1e-5, atol=1e-5), "small-case mismatch"

    # ---- Test 2: longer sequence exercises the multi-KV-step online-softmax
    #      rescale path (Sq, Sk > tq, tkv) --------------------------------
    S2 = 512
    q2 = jax.random.normal(jax.random.fold_in(kq, 1), (B, S2, D), jnp.float32)
    k2 = jax.random.normal(jax.random.fold_in(kk, 1), (B, S2, D), jnp.float32)
    v2 = jax.random.normal(jax.random.fold_in(kv, 1), (B, S2, D), jnp.float32)
    out2 = jax.block_until_ready(fwd(kparams, q2, k2, v2))
    ref2 = reference_mha(torch_params, q2, k2, v2, H)
    assert out2.shape == (B, S2, D)
    assert jnp.allclose(out2, ref2, rtol=2e-5, atol=2e-5), "long-seq mismatch"

    # ---- Test 3: multi-K-step GEMM accumulation in the tiled linear --------
    x = jax.random.normal(kx, (256, 384), jnp.float32)
    w_t = jax.random.normal(kw, (384, 512), jnp.float32) * 0.05
    b = jax.random.normal(kb, (512,), jnp.float32)
    y = jax.block_until_ready(_linear(x, w_t, b, tm=128, tn=128, tk=128))
    y_ref = x @ w_t + b
    assert jnp.allclose(y, y_ref, rtol=1e-5, atol=1e-4), "K-accumulation mismatch"

    print("KERNEL_OK")
</pallas_src>

<mosaic_0001>
module attributes {stable_mosaic.version = 11 : i64} {
  func.func @_linear_kernel(%arg0: i32, %arg1: i32, %arg2: i32, %arg3: memref<16x256xf32, #tpu.memory_space<vmem>>, %arg4: memref<256x256xf32, #tpu.memory_space<vmem>>, %arg5: memref<1x256xf32, #tpu.memory_space<vmem>>, %arg6: memref<16x256xf32, #tpu.memory_space<vmem>>, %arg7: memref<16x256xf32, #tpu.memory_space<vmem>>) attributes {dimension_semantics = [#tpu.dimension_semantics<parallel>, #tpu.dimension_semantics<parallel>, #tpu.dimension_semantics<arbitrary>], iteration_bounds = array<i64: 1, 1, 1>, scalar_prefetch = 0 : i64, scratch_operands = 1 : i64, tpu.core_type = #tpu.core_type<tc>, window_params = [{transform_indices = @transform_0, window_bounds = array<i64: 16, 256>}, {transform_indices = @transform_1, window_bounds = array<i64: 256, 256>}, {transform_indices = @transform_2, window_bounds = array<i64: 1, 256>}, {transform_indices = @transform_3, window_bounds = array<i64: 16, 256>}]} {
    %c0_i32 = arith.constant 0 : i32
    %0 = arith.cmpi eq, %arg2, %c0_i32 : i32
    %1 = arith.extui %0 : i1 to i32
    %c0_i32_0 = arith.constant 0 : i32
    %2 = arith.cmpi ne, %1, %c0_i32_0 : i32
    scf.if %2 {
      %cst_10 = arith.constant 0.000000e+00 : f32
      %12 = vector.broadcast %cst_10 : f32 to vector<16x256xf32>
      %c0_11 = arith.constant 0 : index
      %c0_12 = arith.constant 0 : index
      %13 = vector.load %arg7[%c0_11, %c0_12] : memref<16x256xf32, #tpu.memory_space<vmem>>, vector<16x256xf32>
      tpu.vector_store %arg7[%c0_11, %c0_12], %12 {strides = array<i32>} : memref<16x256xf32, #tpu.memory_space<vmem>>, vector<16x256xf32>,
    } else {
    }
    %c0 = arith.constant 0 : index
    %c0_1 = arith.constant 0 : index
    %3 = vector.load %arg7[%c0, %c0_1] : memref<16x256xf32, #tpu.memory_space<vmem>>, vector<16x256xf32>
    %c0_2 = arith.constant 0 : index
    %c0_3 = arith.constant 0 : index
    %4 = vector.load %arg3[%c0_2, %c0_3] : memref<16x256xf32, #tpu.memory_space<vmem>>, vector<16x256xf32>
    %c0_4 = arith.constant 0 : index
    %c0_5 = arith.constant 0 : index
    %5 = vector.load %arg4[%c0_4, %c0_5] : memref<256x256xf32, #tpu.memory_space<vmem>>, vector<256x256xf32>
    %cst = arith.constant dense<0.000000e+00> : vector<16x256xf32>
    %6 = tpu.matmul %4, %5, %cst {dimension_numbers = #tpu.dot_dimension_numbers<[1], [0], [0], [1], [0, 0, 1, 1], [], []>} : vector<16x256xf32>, vector<256x256xf32>, vector<16x256xf32> -> vector<16x256xf32>
    %7 = arith.addf %3, %6 : vector<16x256xf32>
    %c0_6 = arith.constant 0 : index
    %c0_7 = arith.constant 0 : index
    %8 = vector.load %arg7[%c0_6, %c0_7] : memref<16x256xf32, #tpu.memory_space<vmem>>, vector<16x256xf32>
    tpu.vector_store %arg7[%c0_6, %c0_7], %7 {strides = array<i32>} : memref<16x256xf32, #tpu.memory_space<vmem>>, vector<16x256xf32>,
    %c0_i32_8 = arith.constant 0 : i32
    %9 = arith.cmpi eq, %arg2, %c0_i32_8 : i32
    %10 = arith.extui %9 : i1 to i32
    %c0_i32_9 = arith.constant 0 : i32
    %11 = arith.cmpi ne, %10, %c0_i32_9 : i32
    scf.if %11 {
      %c0_10 = arith.constant 0 : index
      %c0_11 = arith.constant 0 : index
      %12 = vector.load %arg7[%c0_10, %c0_11] : memref<16x256xf32, #tpu.memory_space<vmem>>, vector<16x256xf32>
      %c0_12 = arith.constant 0 : index
      %c0_13 = arith.constant 0 : index
      %13 = vector.load %arg5[%c0_12, %c0_13] : memref<1x256xf32, #tpu.memory_space<vmem>>, vector<1x256xf32>
      %14 = vector.broadcast %13 : vector<1x256xf32> to vector<16x256xf32>
      %15 = arith.addf %12, %14 : vector<16x256xf32>
      %c0_14 = arith.constant 0 : index
      %c0_15 = arith.constant 0 : index
      %16 = vector.load %arg6[%c0_14, %c0_15] : memref<16x256xf32, #tpu.memory_space<vmem>>, vector<16x256xf32>
      tpu.vector_store %arg6[%c0_14, %c0_15], %15 {strides = array<i32>} : memref<16x256xf32, #tpu.memory_space<vmem>>, vector<16x256xf32>,
    } else {
    }
    return
  }
  func.func @transform_0(%arg0: i32, %arg1: i32, %arg2: i32) -> (i32, i32) {
    %c0_i32 = arith.constant 0 : i32
    return %arg0, %arg2 : i32, i32
  }
  func.func @transform_1(%arg0: i32, %arg1: i32, %arg2: i32) -> (i32, i32) {
    %c0_i32 = arith.constant 0 : i32
    return %arg2, %arg1 : i32, i32
  }
  func.func @transform_2(%arg0: i32, %arg1: i32, %arg2: i32) -> (i32, i32) {
    %c0_i32 = arith.constant 0 : i32
    %c0_i32_0 = arith.constant 0 : i32
    return %c0_i32, %arg1 : i32, i32
  }
  func.func @transform_3(%arg0: i32, %arg1: i32, %arg2: i32) -> (i32, i32) {
    %c0_i32 = arith.constant 0 : i32
    return %arg0, %arg1 : i32, i32
  }
}

module attributes {stable_mosaic.version = 11 : i64} {
  func.func @_linear_kernel(%arg0: i32, %arg1: i32, %arg2: i32, %arg3: memref<16x256xf32, #tpu.memory_space<vmem>>, %arg4: memref<256x256xf32, #tpu.memory_space<vmem>>, %arg5: memref<1x256xf32, #tpu.memory_space<vmem>>, %arg6: memref<16x256xf32, #tpu.memory_space<vmem>>, %arg7: memref<16x256xf32, #tpu.memory_space<vmem>>) attributes {dimension_semantics = [#tpu.dimension_semantics<parallel>, #tpu.dimension_semantics<parallel>, #tpu.dimension_semantics<arbitrary>], iteration_bounds = array<i64: 1, 1, 1>, scalar_prefetch = 0 : i64, scratch_operands = 1 : i64, tpu.core_type = #tpu.core_type<tc>, window_params = [{transform_indices = @transform_0, window_bounds = array<i64: 16, 256>}, {transform_indices = @transform_1, window_bounds = array<i64: 256, 256>}, {transform_indices = @transform_2, window_bounds = array<i64: 1, 256>}, {transform_indices = @transform_3, window_bounds = array<i64: 16, 256>}]} {
    %c0_i32 = arith.constant 0 : i32
    %0 = arith.cmpi eq, %arg2, %c0_i32 : i32
    %1 = arith.extui %0 : i1 to i32
    %c0_i32_0 = arith.constant 0 : i32
    %2 = arith.cmpi ne, %1, %c0_i32_0 : i32
    scf.if %2 {
      %cst_10 = arith.constant 0.000000e+00 : f32
      %12 = vector.broadcast %cst_10 : f32 to vector<16x256xf32>
      %c0_11 = arith.constant 0 : index
      %c0_12 = arith.constant 0 : index
      %13 = vector.load %arg7[%c0_11, %c0_12] : memref<16x256xf32, #tpu.memory_space<vmem>>, vector<16x256xf32>
      tpu.vector_store %arg7[%c0_11, %c0_12], %12 {strides = array<i32>} : memref<16x256xf32, #tpu.memory_space<vmem>>, vector<16x256xf32>,
    } else {
    }
    %c0 = arith.constant 0 : index
    %c0_1 = arith.constant 0 : index
    %3 = vector.load %arg7[%c0, %c0_1] : memref<16x256xf32, #tpu.memory_space<vmem>>, vector<16x256xf32>
    %c0_2 = arith.constant 0 : index
    %c0_3 = arith.constant 0 : index
    %4 = vector.load %arg3[%c0_2, %c0_3] : memref<16x256xf32, #tpu.memory_space<vmem>>, vector<16x256xf32>
    %c0_4 = arith.constant 0 : index
    %c0_5 = arith.constant 0 : index
    %5 = vector.load %arg4[%c0_4, %c0_5] : memref<256x256xf32, #tpu.memory_space<vmem>>, vector<256x256xf32>
    %cst = arith.constant dense<0.000000e+00> : vector<16x256xf32>
    %6 = tpu.matmul %4, %5, %cst {dimension_numbers = #tpu.dot_dimension_numbers<[1], [0], [0], [1], [0, 0, 1, 1], [], []>} : vector<16x256xf32>, vector<256x256xf32>, vector<16x256xf32> -> vector<16x256xf32>
    %7 = arith.addf %3, %6 : vector<16x256xf32>
    %c0_6 = arith.constant 0 : index
    %c0_7 = arith.constant 0 : index
    %8 = vector.load %arg7[%c0_6, %c0_7] : memref<16x256xf32, #tpu.memory_space<vmem>>, vector<16x256xf32>
    tpu.vector_store %arg7[%c0_6, %c0_7], %7 {strides = array<i32>} : memref<16x256xf32, #tpu.memory_space<vmem>>, vector<16x256xf32>,
    %c0_i32_8 = arith.constant 0 : i32
    %9 = arith.cmpi eq, %arg2, %c0_i32_8 : i32
    %10 = arith.extui %9 : i1 to i32
    %c0_i32_9 = arith.constant 0 : i32
    %11 = arith.cmpi ne, %10, %c0_i32_9 : i32
    scf.if %11 {
      %c0_10 = arith.constant 0 : index
      %c0_11 = arith.constant 0 : index
      %12 = vector.load %arg7[%c0_10, %c0_11] : memref<16x256xf32, #tpu.memory_space<vmem>>, vector<16x256xf32>
      %c0_12 = arith.constant 0 : index
      %c0_13 = arith.constant 0 : index
      %13 = vector.load %arg5[%c0_12, %c0_13] : memref<1x256xf32, #tpu.memory_space<vmem>>, vector<1x256xf32>
      %14 = vector.broadcast %13 : vector<1x256xf32> to vector<16x256xf32>
      %15 = arith.addf %12, %14 : vector<16x256xf32>
      %c0_14 = arith.constant 0 : index
      %c0_15 = arith.constant 0 : index
      %16 = vector.load %arg6[%c0_14, %c0_15] : memref<16x256xf32, #tpu.memory_space<vmem>>, vector<16x256xf32>
      tpu.vector_store %arg6[%c0_14, %c0_15], %15 {strides = array<i32>} : memref<16x256xf32, #tpu.memory_space<vmem>>, vector<16x256xf32>,
    } else {
    }
    return
  }
  func.func @transform_0(%arg0: i32, %arg1: i32, %arg2: i32) -> (i32, i32) {
    %c0_i32 = arith.constant 0 : i32
    return %arg0, %arg2 : i32, i32
  }
  func.func @transform_1(%arg0: i32, %arg1: i32, %arg2: i32) -> (i32, i32) {
    %c0_i32 = arith.constant 0 : i32
    return %arg2, %arg1 : i32, i32
  }
  func.func @transform_2(%arg0: i32, %arg1: i32, %arg2: i32) -> (i32, i32) {
    %c0_i32 = arith.constant 0 : i32
    %c0_i32_0 = arith.constant 0 : i32
    return %c0_i32, %arg1 : i32, i32
  }
  func.func @transform_3(%arg0: i32, %arg1: i32, %arg2: i32) -> (i32, i32) {
    %c0_i32 = arith.constant 0 : i32
    return %arg0, %arg1 : i32, i32
  }
}

module attributes {stable_mosaic.version = 11 : i64} {
  func.func @_linear_kernel(%arg0: i32, %arg1: i32, %arg2: i32, %arg3: memref<16x256xf32, #tpu.memory_space<vmem>>, %arg4: memref<256x256xf32, #tpu.memory_space<vmem>>, %arg5: memref<1x256xf32, #tpu.memory_space<vmem>>, %arg6: memref<16x256xf32, #tpu.memory_space<vmem>>, %arg7: memref<16x256xf32, #tpu.memory_space<vmem>>) attributes {dimension_semantics = [#tpu.dimension_semantics<parallel>, #tpu.dimension_semantics<parallel>, #tpu.dimension_semantics<arbitrary>], iteration_bounds = array<i64: 1, 1, 1>, scalar_prefetch = 0 : i64, scratch_operands = 1 : i64, tpu.core_type = #tpu.core_type<tc>, window_params = [{transform_indices = @transform_0, window_bounds = array<i64: 16, 256>}, {transform_indices = @transform_1, window_bounds = array<i64: 256, 256>}, {transform_indices = @transform_2, window_bounds = array<i64: 1, 256>}, {transform_indices = @transform_3, window_bounds = array<i64: 16, 256>}]} {
    %c0_i32 = arith.constant 0 : i32
    %0 = arith.cmpi eq, %arg2, %c0_i32 : i32
    %1 = arith.extui %0 : i1 to i32
    %c0_i32_0 = arith.constant 0 : i32
    %2 = arith.cmpi ne, %1, %c0_i32_0 : i32
    scf.if %2 {
      %cst_10 = arith.constant 0.000000e+00 : f32
      %12 = vector.broadcast %cst_10 : f32 to vector<16x256xf32>
      %c0_11 = arith.constant 0 : index
      %c0_12 = arith.constant 0 : index
      %13 = vector.load %arg7[%c0_11, %c0_12] : memref<16x256xf32, #tpu.memory_space<vmem>>, vector<16x256xf32>
      tpu.vector_store %arg7[%c0_11, %c0_12], %12 {strides = array<i32>} : memref<16x256xf32, #tpu.memory_space<vmem>>, vector<16x256xf32>,
    } else {
    }
    %c0 = arith.constant 0 : index
    %c0_1 = arith.constant 0 : index
    %3 = vector.load %arg7[%c0, %c0_1] : memref<16x256xf32, #tpu.memory_space<vmem>>, vector<16x256xf32>
    %c0_2 = arith.constant 0 : index
    %c0_3 = arith.constant 0 : index
    %4 = vector.load %arg3[%c0_2, %c0_3] : memref<16x256xf32, #tpu.memory_space<vmem>>, vector<16x256xf32>
    %c0_4 = arith.constant 0 : index
    %c0_5 = arith.constant 0 : index
    %5 = vector.load %arg4[%c0_4, %c0_5] : memref<256x256xf32, #tpu.memory_space<vmem>>, vector<256x256xf32>
    %cst = arith.constant dense<0.000000e+00> : vector<16x256xf32>
    %6 = tpu.matmul %4, %5, %cst {dimension_numbers = #tpu.dot_dimension_numbers<[1], [0], [0], [1], [0, 0, 1, 1], [], []>} : vector<16x256xf32>, vector<256x256xf32>, vector<16x256xf32> -> vector<16x256xf32>
    %7 = arith.addf %3, %6 : vector<16x256xf32>
    %c0_6 = arith.constant 0 : index
    %c0_7 = arith.constant 0 : index
    %8 = vector.load %arg7[%c0_6, %c0_7] : memref<16x256xf32, #tpu.memory_space<vmem>>, vector<16x256xf32>
    tpu.vector_store %arg7[%c0_6, %c0_7], %7 {strides = array<i32>} : memref<16x256xf32, #tpu.memory_space<vmem>>, vector<16x256xf32>,
    %c0_i32_8 = arith.constant 0 : i32
    %9 = arith.cmpi eq, %arg2, %c0_i32_8 : i32
    %10 = arith.extui %9 : i1 to i32
    %c0_i32_9 = arith.constant 0 : i32
    %11 = arith.cmpi ne, %10, %c0_i32_9 : i32
    scf.if %11 {
      %c0_10 = arith.constant 0 : index
      %c0_11 = arith.constant 0 : index
      %12 = vector.load %arg7[%c0_10, %c0_11] : memref<16x256xf32, #tpu.memory_space<vmem>>, vector<16x256xf32>
      %c0_12 = arith.constant 0 : index
      %c0_13 = arith.constant 0 : index
      %13 = vector.load %arg5[%c0_12, %c0_13] : memref<1x256xf32, #tpu.memory_space<vmem>>, vector<1x256xf32>
      %14 = vector.broadcast %13 : vector<1x256xf32> to vector<16x256xf32>
      %15 = arith.addf %12, %14 : vector<16x256xf32>
      %c0_14 = arith.constant 0 : index
      %c0_15 = arith.constant 0 : index
      %16 = vector.load %arg6[%c0_14, %c0_15] : memref<16x256xf32, #tpu.memory_space<vmem>>, vector<16x256xf32>
      tpu.vector_store %arg6[%c0_14, %c0_15], %15 {strides = array<i32>} : memref<16x256xf32, #tpu.memory_space<vmem>>, vector<16x256xf32>,
    } else {
    }
    return
  }
  func.func @transform_0(%arg0: i32, %arg1: i32, %arg2: i32) -> (i32, i32) {
    %c0_i32 = arith.constant 0 : i32
    return %arg0, %arg2 : i32, i32
  }
  func.func @transform_1(%arg0: i32, %arg1: i32, %arg2: i32) -> (i32, i32) {
    %c0_i32 = arith.constant 0 : i32
    return %arg2, %arg1 : i32, i32
  }
  func.func @transform_2(%arg0: i32, %arg1: i32, %arg2: i32) -> (i32, i32) {
    %c0_i32 = arith.constant 0 : i32
    %c0_i32_0 = arith.constant 0 : i32
    return %c0_i32, %arg1 : i32, i32
  }
  func.func @transform_3(%arg0: i32, %arg1: i32, %arg2: i32) -> (i32, i32) {
    %c0_i32 = arith.constant 0 : i32
    return %arg0, %arg1 : i32, i32
  }
}

module attributes {stable_mosaic.version = 11 : i64} {
  func.func @_flash_attention_kernel(%arg0: i32, %arg1: i32, %arg2: i32, %arg3: memref<1x4x8x64xf32, #tpu.memory_space<vmem>>, %arg4: memref<1x4x8x64xf32, #tpu.memory_space<vmem>>, %arg5: memref<1x4x8x64xf32, #tpu.memory_space<vmem>>, %arg6: memref<1x8x256xf32, #tpu.memory_space<vmem>>, %arg7: memref<4x8x1xf32, #tpu.memory_space<vmem>>, %arg8: memref<4x8x1xf32, #tpu.memory_space<vmem>>, %arg9: memref<4x8x64xf32, #tpu.memory_space<vmem>>) attributes {dimension_semantics = [#tpu.dimension_semantics<parallel>, #tpu.dimension_semantics<parallel>, #tpu.dimension_semantics<arbitrary>], iteration_bounds = array<i64: 2, 1, 1>, scalar_prefetch = 0 : i64, scratch_operands = 3 : i64, tpu.core_type = #tpu.core_type<tc>, window_params = [{transform_indices = @transform_0, window_bounds = array<i64: 1, 4, 8, 64>}, {transform_indices = @transform_1, window_bounds = array<i64: 1, 4, 8, 64>}, {transform_indices = @transform_2, window_bounds = array<i64: 1, 4, 8, 64>}, {transform_indices = @transform_3, window_bounds = array<i64: 1, 8, 256>}]} {
    %c0_i32 = arith.constant 0 : i32
    %0 = arith.cmpi eq, %arg2, %c0_i32 : i32
    %1 = arith.extui %0 : i1 to i32
    %c0_i32_0 = arith.constant 0 : i32
    %2 = arith.cmpi ne, %1, %c0_i32_0 : i32
    scf.if %2 {
      %cst_35 = arith.constant 0xFF800000 : f32
      %35 = vector.broadcast %cst_35 : f32 to vector<4x8x1xf32>
      %c0_36 = arith.constant 0 : index
      %c0_37 = arith.constant 0 : index
      %c0_38 = arith.constant 0 : index
      %36 = vector.load %arg7[%c0_36, %c0_37, %c0_38] : memref<4x8x1xf32, #tpu.memory_space<vmem>>, vector<4x8x1xf32>
      tpu.vector_store %arg7[%c0_36, %c0_37, %c0_38], %35 {strides = array<i32>} : memref<4x8x1xf32, #tpu.memory_space<vmem>>, vector<4x8x1xf32>,
      %cst_39 = arith.constant 0.000000e+00 : f32
      %37 = vector.broadcast %cst_39 : f32 to vector<4x8x1xf32>
      %c0_40 = arith.constant 0 : index
      %c0_41 = arith.constant 0 : index
      %c0_42 = arith.constant 0 : index
      %38 = vector.load %arg8[%c0_40, %c0_41, %c0_42] : memref<4x8x1xf32, #tpu.memory_space<vmem>>, vector<4x8x1xf32>
      tpu.vector_store %arg8[%c0_40, %c0_41, %c0_42], %37 {strides = array<i32>} : memref<4x8x1xf32, #tpu.memory_space<vmem>>, vector<4x8x1xf32>,
      %cst_43 = arith.constant 0.000000e+00 : f32
      %39 = vector.broadcast %cst_43 : f32 to vector<4x8x64xf32>
      %c0_44 = arith.constant 0 : index
      %c0_45 = arith.constant 0 : index
      %c0_46 = arith.constant 0 : index
      %40 = vector.load %arg9[%c0_44, %c0_45, %c0_46] : memref<4x8x64xf32, #tpu.memory_space<vmem>>, vector<4x8x64xf32>
      tpu.vector_store %arg9[%c0_44, %c0_45, %c0_46], %39 {strides = array<i32>} : memref<4x8x64xf32, #tpu.memory_space<vmem>>, vector<4x8x64xf32>,
    } else {
    }
    %c0 = arith.constant 0 : index
    %c0_1 = arith.constant 0 : index
    %c0_2 = arith.constant 0 : index
    %c0_3 = arith.constant 0 : index
    %3 = vector.load %arg3[%c0, %c0_1, %c0_2, %c0_3] : memref<1x4x8x64xf32, #tpu.memory_space<vmem>>, vector<1x4x8x64xf32>
    %4 = vector.shape_cast %3 : vector<1x4x8x64xf32> to vector<4x8x64xf32>
    %c0_4 = arith.constant 0 : index
    %c0_5 = arith.constant 0 : index
    %c0_6 = arith.constant 0 : index
    %c0_7 = arith.constant 0 : index
    %5 = vector.load %arg4[%c0_4, %c0_5, %c0_6, %c0_7] : memref<1x4x8x64xf32, #tpu.memory_space<vmem>>, vector<1x4x8x64xf32>
    %6 = vector.shape_cast %5 : vector<1x4x8x64xf32> to vector<4x8x64xf32>
    %c0_8 = arith.constant 0 : index
    %c0_9 = arith.constant 0 : index
    %c0_10 = arith.constant 0 : index
    %c0_11 = arith.constant 0 : index
    %7 = vector.load %arg5[%c0_8, %c0_9, %c0_10, %c0_11] : memref<1x4x8x64xf32, #tpu.memory_space<vmem>>, vector<1x4x8x64xf32>
    %8 = vector.shape_cast %7 : vector<1x4x8x64xf32> to vector<4x8x64xf32>
    %cst = arith.constant dense<0.000000e+00> : vector<4x8x8xf32>
    %9 = tpu.matmul %4, %6, %cst {dimension_numbers = #tpu.dot_dimension_numbers<[2], [2], [1], [1], [0, 0, 0, 1, 1, 1], [0], [0]>} : vector<4x8x64xf32>, vector<4x8x64xf32>, vector<4x8x8xf32> -> vector<4x8x8xf32>
    %c0_12 = arith.constant 0 : index
    %c0_13 = arith.constant 0 : index
    %c0_14 = arith.constant 0 : index
    %10 = vector.load %arg7[%c0_12, %c0_13, %c0_14] : memref<4x8x1xf32, #tpu.memory_space<vmem>>, vector<4x8x1xf32>
    %cst_15 = arith.constant dense<0xFF800000> : vector<4x8xf32>
    %11 = vector.multi_reduction <maximumf>, %9, %cst_15 [2] : vector<4x8x8xf32> to vector<4x8xf32>
    %12 = vector.shape_cast %11 : vector<4x8xf32> to vector<4x8x1xf32>
    %13 = arith.maximumf %10, %12 : vector<4x8x1xf32>
    %14 = arith.subf %10, %13 : vector<4x8x1xf32>
    %15 = math.exp %14 : vector<4x8x1xf32>
    %16 = vector.broadcast %13 : vector<4x8x1xf32> to vector<4x8x8xf32>
    %17 = arith.subf %9, %16 : vector<4x8x8xf32>
    %18 = math.exp %17 : vector<4x8x8xf32>
    %c0_16 = arith.constant 0 : index
    %c0_17 = arith.constant 0 : index
    %c0_18 = arith.constant 0 : index
    %19 = vector.load %arg8[%c0_16, %c0_17, %c0_18] : memref<4x8x1xf32, #tpu.memory_space<vmem>>, vector<4x8x1xf32>
    %20 = arith.mulf %15, %19 : vector<4x8x1xf32>
    %cst_19 = arith.constant dense<0.000000e+00> : vector<4x8xf32>
    %21 = vector.multi_reduction <add>, %18, %cst_19 [2] : vector<4x8x8xf32> to vector<4x8xf32>
    %22 = vector.shape_cast %21 : vector<4x8xf32> to vector<4x8x1xf32>
    %23 = arith.addf %20, %22 : vector<4x8x1xf32>
    %c0_20 = arith.constant 0 : index
    %c0_21 = arith.constant 0 : index
    %c0_22 = arith.constant 0 : index
    %24 = vector.load %arg8[%c0_20, %c0_21, %c0_22] : memref<4x8x1xf32, #tpu.memory_space<vmem>>, vector<4x8x1xf32>
    tpu.vector_store %arg8[%c0_20, %c0_21, %c0_22], %23 {strides = array<i32>} : memref<4x8x1xf32, #tpu.memory_space<vmem>>, vector<4x8x1xf32>,
    %c0_23 = arith.constant 0 : index
    %c0_24 = arith.constant 0 : index
    %c0_25 = arith.constant 0 : index
    %25 = vector.load %arg9[%c0_23, %c0_24, %c0_25] : memref<4x8x64xf32, #tpu.memory_space<vmem>>, vector<4x8x64xf32>
    %26 = vector.broadcast %15 : vector<4x8x1xf32> to vector<4x8x64xf32>
    %27 = arith.mulf %26, %25 : vector<4x8x64xf32>
    %cst_26 = arith.constant dense<0.000000e+00> : vector<4x8x64xf32>
    %28 = tpu.matmul %18, %8, %cst_26 {dimension_numbers = #tpu.dot_dimension_numbers<[2], [1], [1], [2], [0, 0, 0, 1, 1, 2], [0], [0]>} : vector<4x8x8xf32>, vector<4x8x64xf32>, vector<4x8x64xf32> -> vector<4x8x64xf32>
    %29 = arith.addf %27, %28 : vector<4x8x64xf32>
    %c0_27 = arith.constant 0 : index
    %c0_28 = arith.constant 0 : index
    %c0_29 = arith.constant 0 : index
    %30 = vector.load %arg9[%c0_27, %c0_28, %c0_29] : memref<4x8x64xf32, #tpu.memory_space<vmem>>, vector<4x8x64xf32>
    tpu.vector_store %arg9[%c0_27, %c0_28, %c0_29], %29 {strides = array<i32>} : memref<4x8x64xf32, #tpu.memory_space<vmem>>, vector<4x8x64xf32>,
    %c0_30 = arith.constant 0 : index
    %c0_31 = arith.constant 0 : index
    %c0_32 = arith.constant 0 : index
    %31 = vector.load %arg7[%c0_30, %c0_31, %c0_32] : memref<4x8x1xf32, #tpu.memory_space<vmem>>, vector<4x8x1xf32>
    tpu.vector_store %arg7[%c0_30, %c0_31, %c0_32], %13 {strides = array<i32>} : memref<4x8x1xf32, #tpu.memory_space<vmem>>, vector<4x8x1xf32>,
    %c0_i32_33 = arith.constant 0 : i32
    %32 = arith.cmpi eq, %arg2, %c0_i32_33 : i32
    %33 = arith.extui %32 : i1 to i32
    %c0_i32_34 = arith.constant 0 : i32
    %34 = arith.cmpi ne, %33, %c0_i32_34 : i32
    scf.if %34 {
      %c0_35 = arith.constant 0 : index
      %c0_36 = arith.constant 0 : index
      %c0_37 = arith.constant 0 : index
      %35 = vector.load %arg8[%c0_35, %c0_36, %c0_37] : memref<4x8x1xf32, #tpu.memory_space<vmem>>, vector<4x8x1xf32>
      %36 = tpu.reciprocal %35 : vector<4x8x1xf32> -> vector<4x8x1xf32>
      %c0_38 = arith.constant 0 : index
      %c0_39 = arith.constant 0 : index
      %c0_40 = arith.constant 0 : index
      %37 = vector.load %arg9[%c0_38, %c0_39, %c0_40] : memref<4x8x64xf32, #tpu.memory_space<vmem>>, vector<4x8x64xf32>
      %38 = vector.broadcast %36 : vector<4x8x1xf32> to vector<4x8x64xf32>
      %39 = arith.mulf %37, %38 : vector<4x8x64xf32>
      %40 = vector.extract_strided_slice %39 {offsets = [0, 0, 0], sizes = [1, 8, 64], strides = [1, 1, 1]} : vector<4x8x64xf32> to vector<1x8x64xf32>
      %41 = vector.shape_cast %40 : vector<1x8x64xf32> to vector<8x64xf32>
      %c0_41 = arith.constant 0 : index
      %c0_42 = arith.constant 0 : index
      %c0_43 = arith.constant 0 : index
      %42 = vector.load %arg6[%c0_41, %c0_42, %c0_43] : memref<1x8x256xf32, #tpu.memory_space<vmem>>, vector<1x8x64xf32>
      %43 = vector.shape_cast %42 : vector<1x8x64xf32> to vector<8x64xf32>
      %44 = vector.shape_cast %41 : vector<8x64xf32> to vector<1x8x64xf32>
      tpu.vector_store %arg6[%c0_41, %c0_42, %c0_43], %44 {strides = array<i32>} : memref<1x8x256xf32, #tpu.memory_space<vmem>>, vector<1x8x64xf32>,
      %45 = vector.extract_strided_slice %39 {offsets = [1, 0, 0], sizes = [1, 8, 64], strides = [1, 1, 1]} : vector<4x8x64xf32> to vector<1x8x64xf32>
      %46 = vector.shape_cast %45 : vector<1x8x64xf32> to vector<8x64xf32>
      %c0_44 = arith.constant 0 : index
      %c0_45 = arith.constant 0 : index
      %c64 = arith.constant 64 : index
      %47 = vector.load %arg6[%c0_44, %c0_45, %c64] : memref<1x8x256xf32, #tpu.memory_space<vmem>>, vector<1x8x64xf32>
      %48 = vector.shape_cast %47 : vector<1x8x64xf32> to vector<8x64xf32>
      %49 = vector.shape_cast %46 : vector<8x64xf32> to vector<1x8x64xf32>
      tpu.vector_store %arg6[%c0_44, %c0_45, %c64], %49 {strides = array<i32>} : memref<1x8x256xf32, #tpu.memory_space<vmem>>, vector<1x8x64xf32>,
      %50 = vector.extract_strided_slice %39 {offsets = [2, 0, 0], sizes = [1, 8, 64], strides = [1, 1, 1]} : vector<4x8x64xf32> to vector<1x8x64xf32>
      %51 = vector.shape_cast %50 : vector<1x8x64xf32> to vector<8x64xf32>
      %c0_46 = arith.constant 0 : index
      %c0_47 = arith.constant 0 : index
      %c128 = arith.constant 128 : index
      %52 = vector.load %arg6[%c0_46, %c0_47, %c128] : memref<1x8x256xf32, #tpu.memory_space<vmem>>, vector<1x8x64xf32>
      %53 = vector.shape_cast %52 : vector<1x8x64xf32> to vector<8x64xf32>
      %54 = vector.shape_cast %51 : vector<8x64xf32> to vector<1x8x64xf32>
      tpu.vector_store %arg6[%c0_46, %c0_47, %c128], %54 {strides = array<i32>} : memref<1x8x256xf32, #tpu.memory_space<vmem>>, vector<1x8x64xf32>,
      %55 = vector.extract_strided_slice %39 {offsets = [3, 0, 0], sizes = [1, 8, 64], strides = [1, 1, 1]} : vector<4x8x64xf32> to vector<1x8x64xf32>
      %56 = vector.shape_cast %55 : vector<1x8x64xf32> to vector<8x64xf32>
      %c0_48 = arith.constant 0 : index
      %c0_49 = arith.constant 0 : index
      %c192 = arith.constant 192 : index
      %57 = vector.load %arg6[%c0_48, %c0_49, %c192] : memref<1x8x256xf32, #tpu.memory_space<vmem>>, vector<1x8x64xf32>
      %58 = vector.shape_cast %57 : vector<1x8x64xf32> to vector<8x64xf32>
      %59 = vector.shape_cast %56 : vector<8x64xf32> to vector<1x8x64xf32>
      tpu.vector_store %arg6[%c0_48, %c0_49, %c192], %59 {strides = array<i32>} : memref<1x8x256xf32, #tpu.memory_space<vmem>>, vector<1x8x64xf32>,
    } else {
    }
    return
  }
  func.func @transform_0(%arg0: i32, %arg1: i32, %arg2: i32) -> (i32, i32, i32, i32) {
    %c0_i32 = arith.constant 0 : i32
    %c0_i32_0 = arith.constant 0 : i32
    %c0_i32_1 = arith.constant 0 : i32
    return %arg0, %c0_i32, %arg1, %c0_i32_0 : i32, i32, i32, i32
  }
  func.func @transform_1(%arg0: i32, %arg1: i32, %arg2: i32) -> (i32, i32, i32, i32) {
    %c0_i32 = arith.constant 0 : i32
    %c0_i32_0 = arith.constant 0 : i32
    %c0_i32_1 = arith.constant 0 : i32
    return %arg0, %c0_i32, %arg2, %c0_i32_0 : i32, i32, i32, i32
  }
  func.func @transform_2(%arg0: i32, %arg1: i32, %arg2: i32) -> (i32, i32, i32, i32) {
    %c0_i32 = arith.constant 0 : i32
    %c0_i32_0 = arith.constant 0 : i32
    %c0_i32_1 = arith.constant 0 : i32
    return %arg0, %c0_i32, %arg2, %c0_i32_0 : i32, i32, i32, i32
  }
  func.func @transform_3(%arg0: i32, %arg1: i32, %arg2: i32) -> (i32, i32, i32) {
    %c0_i32 = arith.constant 0 : i32
    %c0_i32_0 = arith.constant 0 : i32
    return %arg0, %arg1, %c0_i32 : i32, i32, i32
  }
}

</mosaic_0001>

<bundles_post_ra>
// kernel: multi_head_attention.7
= control target key start
LH: loop header
LB: loop body
LE: loop exit
PB: predicated region body
PF: predicated region fallthrough
CT: control target
= control target key end

     0   :  { %s513_s1 = inlined_call_operand.vmem [shape: f32[256,256], index: 1, kind: input, shape index: {}]   ;;  %s514_s0 = inlined_call_operand.vmem [shape: f32[16,256], index: 0, kind: input, shape index: {}]   ;;  %s515_s2 = inlined_call_operand.vmem [shape: f32[1,256], index: 2, kind: input, shape index: {}]   ;;  %s516_s3 = inlined_call_operand.vmem [shape: f32[16,256], index: 3, kind: output, shape index: {}]  }
   0x1   :  { %v61_v0 = vld [vmem:[%s513_s1 + $0xf8] sm:$0xff]  ;;  %v60_v1 = vld [vmem:[%s513_s1 + $0xf0] sm:$0xff]  ;;  %v59_v2 = vld [vmem:[%s513_s1 + $0xe8] sm:$0xff] }
   0x2   :  { %94 = vmatprep.subr.mxu0 %v61_v0  ;;  %210 = vmatprep.subr.mxu1 %v61_v0  ;;  %v58_v3 = vld [vmem:[%s513_s1 + $0xe0] sm:$0xff]  ;;  %v57_v4 = vld [vmem:[%s513_s1 + $0xd8] sm:$0xff]  ;;  %v56_v5 = vld [vmem:[%s513_s1 + $0xd0] sm:$0xff] }
   0x3   :  { %95 = vmatpush1.msra.mxu0 %v60_v1  ;;  %242 = vmatpush1.msra.mxu1 %v60_v1  ;;  %v55_v6 = vld [vmem:[%s513_s1 + $0xc8] sm:$0xff]  ;;  %v54_v7 = vld [vmem:[%s513_s1 + $0xc0] sm:$0xff]  ;;  %v53_v8 = vld [vmem:[%s513_s1 + $0xb8] sm:$0xff] }
   0x4   :  { %96 = vmatprep.subr.mxu0 %v59_v2  ;;  %211 = vmatprep.subr.mxu1 %v59_v2  ;;  %v52_v9 = vld [vmem:[%s513_s1 + $0xb0] sm:$0xff]  ;;  %v51_v10 = vld [vmem:[%s513_s1 + $0xa8] sm:$0xff]  ;;  %v50_v11 = vld [vmem:[%s513_s1 + $0xa0] sm:$0xff] }
   0x5   :  { %97 = vmatpush1.msra.mxu0 %v58_v3  ;;  %243 = vmatpush1.msra.mxu1 %v58_v3  ;;  %v49_v12 = vld [vmem:[%s513_s1 + $0x98] sm:$0xff]  ;;  %v48_v13 = vld [vmem:[%s513_s1 + $0x90] sm:$0xff]  ;;  %v47_v14 = vld [vmem:[%s513_s1 + $0x88] sm:$0xff] }
   0x6   :  { %98 = vmatprep.subr.mxu0 %v57_v4  ;;  %212 = vmatprep.subr.mxu1 %v57_v4  ;;  %v46_v15 = vld [vmem:[%s513_s1 + $0x80] sm:$0xff]  ;;  %v45_v16 = vld [vmem:[%s513_s1 + $0x78] sm:$0xff]  ;;  %v44_v17 = vld [vmem:[%s513_s1 + $0x70] sm:$0xff]  ;;  %v188_v4 = vlaneseq }
   0x7   :  { %99 = vmatpush1.msra.mxu0 %v56_v5  ;;  %244 = vmatpush1.msra.mxu1 %v56_v5  ;;  %v43_v18 = vld [vmem:[%s513_s1 + $0x68] sm:$0xff]  ;;  %v42_v19 = vld [vmem:[%s513_s1 + $0x60] sm:$0xff]  ;;  %v41_v20 = vld [vmem:[%s513_s1 + $0x58] sm:$0xff] }
   0x8   :  { %100 = vmatprep.subr.mxu0 %v55_v6  ;;  %213 = vmatprep.subr.mxu1 %v55_v6  ;;  %v40_v21 = vld [vmem:[%s513_s1 + $0x50] sm:$0xff]  ;;  %v39_v22 = vld [vmem:[%s513_s1 + $0x48] sm:$0xff]  ;;  %v38_v23 = vld [vmem:[%s513_s1 + $0x40] sm:$0xff]  ;;  %v189_v5 = vshrl.u32 %v188_v4, 7 }
   0x9   :  { %101 = vmatpush1.msra.mxu0 %v54_v7  ;;  %245 = vmatpush1.msra.mxu1 %v54_v7  ;;  %v37_v24 = vld [vmem:[%s513_s1 + $0x38] sm:$0xff]  ;;  %v36_v25 = vld [vmem:[%s513_s1 + $0x30] sm:$0xff]  ;;  %v35_v26 = vld [vmem:[%s513_s1 + $0x28] sm:$0xff] }
   0xa   :  { %102 = vmatprep.subr.mxu0 %v53_v8  ;;  %214 = vmatprep.subr.mxu1 %v53_v8  ;;  %v34_v27 = vld [vmem:[%s513_s1 + $0x20] sm:$0xff]  ;;  %v33_v28 = vld [vmem:[%s513_s1 + $0x18] sm:$0xff]  ;;  %v32_v29 = vld [vmem:[%s513_s1 + $0x10] sm:$0xff]  ;;  %v190_v6 = vsub.s32 0, %v189_v5  ;;  %v194_v8 = vsub.s32 1, %v189_v5 }
   0xb   :  { %103 = vmatpush1.msra.mxu0 %v52_v9  ;;  %246 = vmatpush1.msra.mxu1 %v52_v9  ;;  %v31_v30 = vld [vmem:[%s513_s1 + $0x8] sm:$0xff]  ;;  %v30_v31 = vld [vmem:[%s513_s1] sm:$0xff]  ;;  %v93_v32 = vld [vmem:[%s513_s1 + $0x1f8] sm:$0xff] }
   0xc   :  { %104 = vmatprep.subr.mxu0 %v51_v10  ;;  %215 = vmatprep.subr.mxu1 %v51_v10  ;;  %v92_v33 = vld [vmem:[%s513_s1 + $0x1f0] sm:$0xff]  ;;  %v91_v34 = vld [vmem:[%s513_s1 + $0x1e8] sm:$0xff]  ;;  %v90_v35 = vld [vmem:[%s513_s1 + $0x1e0] sm:$0xff] }
   0xd   :  { %105 = vmatpush1.msra.mxu0 %v50_v11  ;;  %247 = vmatpush1.msra.mxu1 %v50_v11  ;;  %v89_v36 = vld [vmem:[%s513_s1 + $0x1d8] sm:$0xff]  ;;  %v88_v37 = vld [vmem:[%s513_s1 + $0x1d0] sm:$0xff]  ;;  %v87_v38 = vld [vmem:[%s513_s1 + $0x1c8] sm:$0xff] }
   0xe   :  { %106 = vmatprep.subr.mxu0 %v49_v12  ;;  %216 = vmatprep.subr.mxu1 %v49_v12  ;;  %v86_v39 = vld [vmem:[%s513_s1 + $0x1c0] sm:$0xff]  ;;  %v85_v40 = vld [vmem:[%s513_s1 + $0x1b8] sm:$0xff]  ;;  %v84_v41 = vld [vmem:[%s513_s1 + $0x1b0] sm:$0xff] }
   0xf   :  { %107 = vmatpush1.msra.mxu0 %v48_v13  ;;  %248 = vmatpush1.msra.mxu1 %v48_v13  ;;  %v83_v42 = vld [vmem:[%s513_s1 + $0x1a8] sm:$0xff]  ;;  %v82_v43 = vld [vmem:[%s513_s1 + $0x1a0] sm:$0xff]  ;;  %v81_v44 = vld [vmem:[%s513_s1 + $0x198] sm:$0xff] }
  0x10   :  { %108 = vmatprep.subr.mxu0 %v47_v14  ;;  %217 = vmatprep.subr.mxu1 %v47_v14  ;;  %v80_v45 = vld [vmem:[%s513_s1 + $0x190] sm:$0xff]  ;;  %v79_v46 = vld [vmem:[%s513_s1 + $0x188] sm:$0xff]  ;;  %v78_v47 = vld [vmem:[%s513_s1 + $0x180] sm:$0xff] }
  0x11   :  { %109 = vmatpush1.msra.mxu0 %v46_v15  ;;  %249 = vmatpush1.msra.mxu1 %v46_v15  ;;  %v77_v48 = vld [vmem:[%s513_s1 + $0x178] sm:$0xff]  ;;  %v76_v49 = vld [vmem:[%s513_s1 + $0x170] sm:$0xff]  ;;  %v75_v50 = vld [vmem:[%s513_s1 + $0x168] sm:$0xff] }
  0x12   :  { %110 = vmatprep.subr.mxu0 %v45_v16  ;;  %218 = vmatprep.subr.mxu1 %v45_v16  ;;  %v74_v51 = vld [vmem:[%s513_s1 + $0x160] sm:$0xff]  ;;  %v73_v52 = vld [vmem:[%s513_s1 + $0x158] sm:$0xff]  ;;  %v72_v53 = vld [vmem:[%s513_s1 + $0x150] sm:$0xff] }
  0x13   :  { %111 = vmatpush1.msra.mxu0 %v44_v17  ;;  %250 = vmatpush1.msra.mxu1 %v44_v17  ;;  %v71_v54 = vld [vmem:[%s513_s1 + $0x148] sm:$0xff]  ;;  %v70_v55 = vld [vmem:[%s513_s1 + $0x140] sm:$0xff]  ;;  %v69_v56 = vld [vmem:[%s513_s1 + $0x138] sm:$0xff] }
  0x14   :  { %112 = vmatprep.subr.mxu0 %v43_v18  ;;  %219 = vmatprep.subr.mxu1 %v43_v18  ;;  %v68_v57 = vld [vmem:[%s513_s1 + $0x130] sm:$0xff]  ;;  %v67_v58 = vld [vmem:[%s513_s1 + $0x128] sm:$0xff]  ;;  %v66_v59 = vld [vmem:[%s513_s1 + $0x120] sm:$0xff] }
  0x15   :  { %113 = vmatpush1.msra.mxu0 %v42_v19  ;;  %251 = vmatpush1.msra.mxu1 %v42_v19  ;;  %v65_v60 = vld [vmem:[%s513_s1 + $0x118] sm:$0xff]  ;;  %v64_v61 = vld [vmem:[%s513_s1 + $0x110] sm:$0xff]  ;;  %v63_v62 = vld [vmem:[%s513_s1 + $0x108] sm:$0xff] }
  0x16   :  { %114 = vmatprep.subr.mxu0 %v41_v20  ;;  %220 = vmatprep.subr.mxu1 %v41_v20  ;;  %v62_v63 = vld [vmem:[%s513_s1 + $0x100] sm:$0xff]  ;;  %v27_v0 = vld [vmem:[%s514_s0 + $0x8] sm:$0xff]  ;;  %v29_v1 = vld [vmem:[%s514_s0 + $0x18] sm:$0xff] }
  0x17   :  { %115 = vmatpush1.msra.mxu0 %v40_v21  ;;  %252 = vmatpush1.msra.mxu1 %v40_v21  ;;  %v26_v2 = vld [vmem:[%s514_s0] sm:$0xff]  ;;  %v28_v3 = vld [vmem:[%s514_s0 + $0x10] sm:$0xff] }
  0x18   :  { %116 = vmatprep.subr.mxu0 %v39_v22  ;;  %221 = vmatprep.subr.mxu1 %v39_v22  ;;  %v186_v7 = vld [vmem:[%s515_s2] sm:$0x3] }
  0x19   :  { %117 = vmatpush1.msra.mxu0 %v38_v23  ;;  %253 = vmatpush1.msra.mxu1 %v38_v23  ;;  %v191_v9 = vrot.slane %v186_v7, %v190_v6  ;;  %v195_v10 = vrot.slane %v186_v7, %v194_v8 }
  0x1a   :  { %118 = vmatprep.subr.mxu0 %v37_v24  ;;  %222 = vmatprep.subr.mxu1 %v37_v24 }
  0x1b   :  { %119 = vmatpush1.msra.mxu0 %v36_v25  ;;  %254 = vmatpush1.msra.mxu1 %v36_v25 }
  0x1c   :  { %120 = vmatprep.subr.mxu0 %v35_v26  ;;  %223 = vmatprep.subr.mxu1 %v35_v26 }
  0x1d   :  { %121 = vmatpush1.msra.mxu0 %v34_v27  ;;  %255 = vmatpush1.msra.mxu1 %v34_v27 }
  0x1e   :  { %122 = vmatprep.subr.mxu0 %v33_v28  ;;  %224 = vmatprep.subr.mxu1 %v33_v28 }
  0x1f   :  { %123 = vmatpush1.msra.mxu0 %v32_v29  ;;  %256 = vmatpush1.msra.mxu1 %v32_v29 }
  0x20   :  { %124 = vmatprep.subr.mxu0 %v31_v30  ;;  %225 = vmatprep.subr.mxu1 %v31_v30 }
  0x21   :  { %125 = vmatpush1.msra.mxu0 %v30_v31  ;;  %257 = vmatpush1.msra.mxu1 %v30_v31 }
  0x22   :  { %126 = vmatprep.subr.mxu0 %v93_v32  ;;  %226 = vmatprep.subr.mxu1 %v93_v32 }
  0x23   :  { %127 = vmatpush2.msra.mxu0 %v92_v33  ;;  %258 = vmatpush2.msra.mxu1 %v92_v33 }
  0x24   :  { %128 = vmatprep.subr.mxu0 %v91_v34  ;;  %227 = vmatprep.subr.mxu1 %v91_v34 }
  0x25   :  { %129 = vmatpush2.msra.mxu0 %v90_v35  ;;  %259 = vmatpush2.msra.mxu1 %v90_v35 }
  0x26   :  { %130 = vmatprep.subr.mxu0 %v89_v36  ;;  %228 = vmatprep.subr.mxu1 %v89_v36 }
  0x27   :  { %131 = vmatpush2.msra.mxu0 %v88_v37  ;;  %260 = vmatpush2.msra.mxu1 %v88_v37 }
  0x28   :  { %132 = vmatprep.subr.mxu0 %v87_v38  ;;  %229 = vmatprep.subr.mxu1 %v87_v38 }
  0x29   :  { %133 = vmatpush2.msra.mxu0 %v86_v39  ;;  %261 = vmatpush2.msra.mxu1 %v86_v39 }
  0x2a   :  { %134 = vmatprep.subr.mxu0 %v85_v40  ;;  %230 = vmatprep.subr.mxu1 %v85_v40 }
  0x2b   :  { %135 = vmatpush2.msra.mxu0 %v84_v41  ;;  %262 = vmatpush2.msra.mxu1 %v84_v41 }
  0x2c   :  { %136 = vmatprep.subr.mxu0 %v83_v42  ;;  %231 = vmatprep.subr.mxu1 %v83_v42 }
  0x2d   :  { %137 = vmatpush2.msra.mxu0 %v82_v43  ;;  %263 = vmatpush2.msra.mxu1 %v82_v43 }
  0x2e   :  { %138 = vmatprep.subr.mxu0 %v81_v44  ;;  %232 = vmatprep.subr.mxu1 %v81_v44 }
  0x2f   :  { %139 = vmatpush2.msra.mxu0 %v80_v45  ;;  %264 = vmatpush2.msra.mxu1 %v80_v45 }
  0x30   :  { %140 = vmatprep.subr.mxu0 %v79_v46  ;;  %233 = vmatprep.subr.mxu1 %v79_v46 }
  0x31   :  { %141 = vmatpush2.msra.mxu0 %v78_v47  ;;  %265 = vmatpush2.msra.mxu1 %v78_v47 }
  0x32   :  { %142 = vmatprep.subr.mxu0 %v77_v48  ;;  %234 = vmatprep.subr.mxu1 %v77_v48 }
  0x33   :  { %143 = vmatpush2.msra.mxu0 %v76_v49  ;;  %266 = vmatpush2.msra.mxu1 %v76_v49 }
  0x34   :  { %144 = vmatprep.subr.mxu0 %v75_v50  ;;  %235 = vmatprep.subr.mxu1 %v75_v50 }
  0x35   :  { %145 = vmatpush2.msra.mxu0 %v74_v51  ;;  %267 = vmatpush2.msra.mxu1 %v74_v51 }
  0x36   :  { %146 = vmatprep.subr.mxu0 %v73_v52  ;;  %236 = vmatprep.subr.mxu1 %v73_v52 }
  0x37   :  { %147 = vmatpush2.msra.mxu0 %v72_v53  ;;  %268 = vmatpush2.msra.mxu1 %v72_v53 }
  0x38   :  { %148 = vmatprep.subr.mxu0 %v71_v54  ;;  %237 = vmatprep.subr.mxu1 %v71_v54 }
  0x39   :  { %149 = vmatpush2.msra.mxu0 %v70_v55  ;;  %269 = vmatpush2.msra.mxu1 %v70_v55 }
  0x3a   :  { %150 = vmatprep.subr.mxu0 %v69_v56  ;;  %238 = vmatprep.subr.mxu1 %v69_v56 }
  0x3b   :  { %151 = vmatpush2.msra.mxu0 %v68_v57  ;;  %270 = vmatpush2.msra.mxu1 %v68_v57 }
  0x3c   :  { %152 = vmatprep.subr.mxu0 %v67_v58  ;;  %239 = vmatprep.subr.mxu1 %v67_v58 }
  0x3d   :  { %153 = vmatpush2.msra.mxu0 %v66_v59  ;;  %271 = vmatpush2.msra.mxu1 %v66_v59 }
  0x3e   :  { %154 = vmatprep.subr.mxu0 %v65_v60  ;;  %240 = vmatprep.subr.mxu1 %v65_v60 }
  0x3f   :  { %155 = vmatpush2.msra.mxu0 %v64_v61  ;;  %272 = vmatpush2.msra.mxu1 %v64_v61 }
  0x40   :  { %156 = vmatprep.subr.mxu0 %v63_v62  ;;  %241 = vmatprep.subr.mxu1 %v63_v62 }
  0x41   :  { %157 = vmatpush2.msra.mxu0 %v62_v63  ;;  %273 = vmatpush2.msra.mxu1 %v62_v63 }
  0x42   :  { %158 = vmatprep.mubr.f32.mxu0 %v27_v0  ;;  %164 = vmatprep.mubr.f32.mxu1 %v29_v1 }
  0x43   :  { %159 = vmatmul.mubr.f32.vlgmr.msra.gmra.mxu0 %v26_v2  ;;  %165 = vmatmul.mubr.f32.vlgmr.msra.gmra.mxu1 %v28_v3 }
 0x103   :  { %v160_v11 = vpop.f32.mrf.mxu0  ;;  %v166_v12 = vpop.f32.mrf.mxu1 }
 0x104   :  { %v198_v13 = vadd.f32 %v191_v9, %v160_v11  ;;  %v200_v14 = vadd.f32 %v191_v9, %v166_v12 }
 0x105   :  { %v162_v15 = vpop.f32.mrf.mxu0  ;;  %v168_v16 = vpop.f32.mrf.mxu1 }
 0x106   :  { %202 = vst [vmem:[%s516_s3] sm:$0xff] %v198_v13  ;;  %204 = vst [vmem:[%s516_s3 + $0x10] sm:$0xff] %v200_v14  ;;  %v199_v17 = vadd.f32 %v195_v10, %v162_v15  ;;  %v201_v18 = vadd.f32 %v195_v10, %v168_v16 }
 0x108   :  { %203 = vst [vmem:[%s516_s3 + $0x8] sm:$0xff] %v199_v17  ;;  %205 = vst [vmem:[%s516_s3 + $0x18] sm:$0xff] %v201_v18 }

// kernel: multi_head_attention.6
= control target key start
LH: loop header
LB: loop body
LE: loop exit
PB: predicated region body
PF: predicated region fallthrough
CT: control target
= control target key end

     0   :  { %8 = vsyncpa [#allocation4], 0  ;;  %s397_s0 = inlined_call_operand.hbm [shape: f32[16,256], index: 0, kind: input, shape index: {}]   ;;  %s398_s1 = inlined_call_operand.hbm [shape: f32[256,256], index: 1, kind: input, shape index: {}]   ;;  %s399_s2 = inlined_call_operand.vmem [shape: f32[1,256], index: 2, kind: input, shape index: {}]   ;;  %s400_s3 = inlined_call_operand.vmem [shape: f32[16,256], index: 3, kind: output, shape index: {}]  }
   0x1   :  { %9 = vsyncpa [#allocation6], 0  ;;  %s352_s12 = smov [#allocation3]  }
   0x2   :  { %s15_s13 = sshll.u32 %s352_s12, 4  ;;  %s16_s13 = int_to_ptr.vmem [resolvable:$true] %s15_s13 }
   0x3   :  { %s316_s14 = scalar_lea.vmem %s16_s13, 512  ;;  %p321_p1 = scmp.lt.s32.totalorder %s16_s13, %s16_s13 }
   0x4   :  { %p317_p0 = scmp.ne.s32.totalorder %s16_s13, %s316_s14  ;;  %p322_p2 = scmp.lt.s32.totalorder %s316_s14, %s316_s14 }
   0x6   :  { %p323_p3 = por %p322_p2, %p321_p1 }
   0x8   :  { %p324_p4 = pnand %p323_p3, %p317_p0 }
   0xa   :  { %327 = shalt.err (!%p324_p4)
}
   0xb   :  { %s353_s15 = smov 256   ;;  %s354_s16 = smov 16  }
   0xc   :  { %21 = dma.hbm_to_vmem [thread:$0]  %s397_s0, 512, %s16_s13, [#allocation4], %s353_s15, %s353_s15, %s354_s16  }
   0xd   :  { %s355_s19 = smov [#allocation5]  }
   0xe   :  { %s27_s20 = sshll.u32 %s355_s19, 4  ;;  %s28_s20 = int_to_ptr.vmem [resolvable:$true] %s27_s20 }
   0xf   :  { %s336_s21 = scalar_lea.vmem %s28_s20, 8192  ;;  %p341_p6 = scmp.lt.s32.totalorder %s28_s20, %s28_s20 }
  0x10   :  { %p337_p5 = scmp.ne.s32.totalorder %s28_s20, %s336_s21  ;;  %p342_p7 = scmp.lt.s32.totalorder %s336_s21, %s336_s21 }
  0x12   :  { %p343_p8 = por %p342_p7, %p341_p6 }
  0x14   :  { %p344_p9 = pnand %p343_p8, %p337_p5 }
  0x16   :  { %347 = shalt.err (!%p344_p9)
}
  0x17   :  { %33 = dma.hbm_to_vmem [thread:$0]  %s398_s1, 8192, %s28_s20, [#allocation6], %s353_s15, %s353_s15, %s354_s16  }
  0x18   :  { %348 = dma.done.wait [#allocation4], 512  }
  0x19   :  { %349 = vsyncadd [#allocation4], 4294966784 }
  0x1a   :  { %350 = dma.done.wait [#allocation6], 8192  }
  0x1b   :  { %351 = vsyncadd [#allocation6], 4294959104  ;;  %v89_v0 = vld [vmem:[#allocation5 + $0xf8] sm:$0xff]  ;;  %v88_v1 = vld [vmem:[#allocation5 + $0xf0] sm:$0xff] }
  0x1c   :  { %v87_v2 = vld [vmem:[#allocation5 + $0xe8] sm:$0xff]  ;;  %122 = vmatprep.subr.mxu0 %v89_v0  ;;  %240 = vmatprep.subr.mxu1 %v89_v0  ;;  %v86_v3 = vld [vmem:[#allocation5 + $0xe0] sm:$0xff]  ;;  %v85_v4 = vld [vmem:[#allocation5 + $0xd8] sm:$0xff] }
  0x1d   :  { %123 = vmatpush1.msra.mxu0 %v88_v1  ;;  %272 = vmatpush1.msra.mxu1 %v88_v1  ;;  %v84_v5 = vld [vmem:[#allocation5 + $0xd0] sm:$0xff]  ;;  %v83_v6 = vld [vmem:[#allocation5 + $0xc8] sm:$0xff]  ;;  %v82_v7 = vld [vmem:[#allocation5 + $0xc0] sm:$0xff] }
  0x1e   :  { %124 = vmatprep.subr.mxu0 %v87_v2  ;;  %241 = vmatprep.subr.mxu1 %v87_v2  ;;  %v81_v8 = vld [vmem:[#allocation5 + $0xb8] sm:$0xff]  ;;  %v80_v9 = vld [vmem:[#allocation5 + $0xb0] sm:$0xff]  ;;  %v79_v10 = vld [vmem:[#allocation5 + $0xa8] sm:$0xff] }
  0x1f   :  { %125 = vmatpush1.msra.mxu0 %v86_v3  ;;  %273 = vmatpush1.msra.mxu1 %v86_v3  ;;  %v78_v11 = vld [vmem:[#allocation5 + $0xa0] sm:$0xff]  ;;  %v77_v12 = vld [vmem:[#allocation5 + $0x98] sm:$0xff]  ;;  %v76_v13 = vld [vmem:[#allocation5 + $0x90] sm:$0xff] }
  0x20   :  { %126 = vmatprep.subr.mxu0 %v85_v4  ;;  %242 = vmatprep.subr.mxu1 %v85_v4  ;;  %v75_v14 = vld [vmem:[#allocation5 + $0x88] sm:$0xff]  ;;  %v74_v15 = vld [vmem:[#allocation5 + $0x80] sm:$0xff]  ;;  %v73_v16 = vld [vmem:[#allocation5 + $0x78] sm:$0xff]  ;;  %v216_v4 = vlaneseq }
  0x21   :  { %127 = vmatpush1.msra.mxu0 %v84_v5  ;;  %274 = vmatpush1.msra.mxu1 %v84_v5  ;;  %v72_v17 = vld [vmem:[#allocation5 + $0x70] sm:$0xff]  ;;  %v71_v18 = vld [vmem:[#allocation5 + $0x68] sm:$0xff]  ;;  %v70_v19 = vld [vmem:[#allocation5 + $0x60] sm:$0xff] }
  0x22   :  { %128 = vmatprep.subr.mxu0 %v83_v6  ;;  %243 = vmatprep.subr.mxu1 %v83_v6  ;;  %v69_v20 = vld [vmem:[#allocation5 + $0x58] sm:$0xff]  ;;  %v68_v21 = vld [vmem:[#allocation5 + $0x50] sm:$0xff]  ;;  %v67_v22 = vld [vmem:[#allocation5 + $0x48] sm:$0xff]  ;;  %v217_v5 = vshrl.u32 %v216_v4, 7 }
  0x23   :  { %129 = vmatpush1.msra.mxu0 %v82_v7  ;;  %275 = vmatpush1.msra.mxu1 %v82_v7  ;;  %v66_v23 = vld [vmem:[#allocation5 + $0x40] sm:$0xff]  ;;  %v65_v24 = vld [vmem:[#allocation5 + $0x38] sm:$0xff]  ;;  %v64_v25 = vld [vmem:[#allocation5 + $0x30] sm:$0xff] }
  0x24   :  { %130 = vmatprep.subr.mxu0 %v81_v8  ;;  %244 = vmatprep.subr.mxu1 %v81_v8  ;;  %v63_v26 = vld [vmem:[#allocation5 + $0x28] sm:$0xff]  ;;  %v62_v27 = vld [vmem:[#allocation5 + $0x20] sm:$0xff]  ;;  %v61_v28 = vld [vmem:[#allocation5 + $0x18] sm:$0xff]  ;;  %v218_v6 = vsub.s32 0, %v217_v5  ;;  %v222_v8 = vsub.s32 1, %v217_v5 }
  0x25   :  { %131 = vmatpush1.msra.mxu0 %v80_v9  ;;  %276 = vmatpush1.msra.mxu1 %v80_v9  ;;  %v60_v29 = vld [vmem:[#allocation5 + $0x10] sm:$0xff]  ;;  %v59_v30 = vld [vmem:[#allocation5 + $0x8] sm:$0xff]  ;;  %v58_v31 = vld [vmem:[#allocation5] sm:$0xff] }
  0x26   :  { %132 = vmatprep.subr.mxu0 %v79_v10  ;;  %245 = vmatprep.subr.mxu1 %v79_v10  ;;  %v121_v32 = vld [vmem:[#allocation5 + $0x1f8] sm:$0xff]  ;;  %v120_v33 = vld [vmem:[#allocation5 + $0x1f0] sm:$0xff]  ;;  %v119_v34 = vld [vmem:[#allocation5 + $0x1e8] sm:$0xff] }
  0x27   :  { %133 = vmatpush1.msra.mxu0 %v78_v11  ;;  %277 = vmatpush1.msra.mxu1 %v78_v11  ;;  %v118_v35 = vld [vmem:[#allocation5 + $0x1e0] sm:$0xff]  ;;  %v117_v36 = vld [vmem:[#allocation5 + $0x1d8] sm:$0xff]  ;;  %v116_v37 = vld [vmem:[#allocation5 + $0x1d0] sm:$0xff] }
  0x28   :  { %134 = vmatprep.subr.mxu0 %v77_v12  ;;  %246 = vmatprep.subr.mxu1 %v77_v12  ;;  %v115_v38 = vld [vmem:[#allocation5 + $0x1c8] sm:$0xff]  ;;  %v114_v39 = vld [vmem:[#allocation5 + $0x1c0] sm:$0xff]  ;;  %v113_v40 = vld [vmem:[#allocation5 + $0x1b8] sm:$0xff] }
  0x29   :  { %135 = vmatpush1.msra.mxu0 %v76_v13  ;;  %278 = vmatpush1.msra.mxu1 %v76_v13  ;;  %v112_v41 = vld [vmem:[#allocation5 + $0x1b0] sm:$0xff]  ;;  %v111_v42 = vld [vmem:[#allocation5 + $0x1a8] sm:$0xff]  ;;  %v110_v43 = vld [vmem:[#allocation5 + $0x1a0] sm:$0xff] }
  0x2a   :  { %136 = vmatprep.subr.mxu0 %v75_v14  ;;  %247 = vmatprep.subr.mxu1 %v75_v14  ;;  %v109_v44 = vld [vmem:[#allocation5 + $0x198] sm:$0xff]  ;;  %v108_v45 = vld [vmem:[#allocation5 + $0x190] sm:$0xff]  ;;  %v107_v46 = vld [vmem:[#allocation5 + $0x188] sm:$0xff] }
  0x2b   :  { %137 = vmatpush1.msra.mxu0 %v74_v15  ;;  %279 = vmatpush1.msra.mxu1 %v74_v15  ;;  %v106_v47 = vld [vmem:[#allocation5 + $0x180] sm:$0xff]  ;;  %v105_v48 = vld [vmem:[#allocation5 + $0x178] sm:$0xff]  ;;  %v104_v49 = vld [vmem:[#allocation5 + $0x170] sm:$0xff] }
  0x2c   :  { %138 = vmatprep.subr.mxu0 %v73_v16  ;;  %248 = vmatprep.subr.mxu1 %v73_v16  ;;  %v103_v50 = vld [vmem:[#allocation5 + $0x168] sm:$0xff]  ;;  %v102_v51 = vld [vmem:[#allocation5 + $0x160] sm:$0xff]  ;;  %v101_v52 = vld [vmem:[#allocation5 + $0x158] sm:$0xff] }
  0x2d   :  { %139 = vmatpush1.msra.mxu0 %v72_v17  ;;  %280 = vmatpush1.msra.mxu1 %v72_v17  ;;  %v100_v53 = vld [vmem:[#allocation5 + $0x150] sm:$0xff]  ;;  %v99_v54 = vld [vmem:[#allocation5 + $0x148] sm:$0xff]  ;;  %v98_v55 = vld [vmem:[#allocation5 + $0x140] sm:$0xff] }
  0x2e   :  { %140 = vmatprep.subr.mxu0 %v71_v18  ;;  %249 = vmatprep.subr.mxu1 %v71_v18  ;;  %v97_v56 = vld [vmem:[#allocation5 + $0x138] sm:$0xff]  ;;  %v96_v57 = vld [vmem:[#allocation5 + $0x130] sm:$0xff]  ;;  %v95_v58 = vld [vmem:[#allocation5 + $0x128] sm:$0xff] }
  0x2f   :  { %141 = vmatpush1.msra.mxu0 %v70_v19  ;;  %281 = vmatpush1.msra.mxu1 %v70_v19  ;;  %v94_v59 = vld [vmem:[#allocation5 + $0x120] sm:$0xff]  ;;  %v93_v60 = vld [vmem:[#allocation5 + $0x118] sm:$0xff]  ;;  %v92_v61 = vld [vmem:[#allocation5 + $0x110] sm:$0xff] }
  0x30   :  { %142 = vmatprep.subr.mxu0 %v69_v20  ;;  %250 = vmatprep.subr.mxu1 %v69_v20  ;;  %v91_v62 = vld [vmem:[#allocation5 + $0x108] sm:$0xff]  ;;  %v90_v63 = vld [vmem:[#allocation5 + $0x100] sm:$0xff]  ;;  %v57_v1 = vld [vmem:[#allocation3 + $0x18] sm:$0xff] }
  0x31   :  { %143 = vmatpush1.msra.mxu0 %v68_v21  ;;  %282 = vmatpush1.msra.mxu1 %v68_v21  ;;  %v55_v0 = vld [vmem:[#allocation3 + $0x8] sm:$0xff]  ;;  %v54_v2 = vld [vmem:[#allocation3] sm:$0xff]  ;;  %v56_v3 = vld [vmem:[#allocation3 + $0x10] sm:$0xff] }
  0x32   :  { %144 = vmatprep.subr.mxu0 %v67_v22  ;;  %251 = vmatprep.subr.mxu1 %v67_v22  ;;  %v214_v7 = vld [vmem:[%s399_s2] sm:$0x3] }
  0x33   :  { %145 = vmatpush1.msra.mxu0 %v66_v23  ;;  %283 = vmatpush1.msra.mxu1 %v66_v23  ;;  %v219_v9 = vrot.slane %v214_v7, %v218_v6  ;;  %v223_v10 = vrot.slane %v214_v7, %v222_v8 }
  0x34   :  { %146 = vmatprep.subr.mxu0 %v65_v24  ;;  %252 = vmatprep.subr.mxu1 %v65_v24 }
  0x35   :  { %147 = vmatpush1.msra.mxu0 %v64_v25  ;;  %284 = vmatpush1.msra.mxu1 %v64_v25 }
  0x36   :  { %148 = vmatprep.subr.mxu0 %v63_v26  ;;  %253 = vmatprep.subr.mxu1 %v63_v26 }
  0x37   :  { %149 = vmatpush1.msra.mxu0 %v62_v27  ;;  %285 = vmatpush1.msra.mxu1 %v62_v27 }
  0x38   :  { %150 = vmatprep.subr.mxu0 %v61_v28  ;;  %254 = vmatprep.subr.mxu1 %v61_v28 }
  0x39   :  { %151 = vmatpush1.msra.mxu0 %v60_v29  ;;  %286 = vmatpush1.msra.mxu1 %v60_v29 }
  0x3a   :  { %152 = vmatprep.subr.mxu0 %v59_v30  ;;  %255 = vmatprep.subr.mxu1 %v59_v30 }
  0x3b   :  { %153 = vmatpush1.msra.mxu0 %v58_v31  ;;  %287 = vmatpush1.msra.mxu1 %v58_v31 }
  0x3c   :  { %154 = vmatprep.subr.mxu0 %v121_v32  ;;  %256 = vmatprep.subr.mxu1 %v121_v32 }
  0x3d   :  { %155 = vmatpush2.msra.mxu0 %v120_v33  ;;  %288 = vmatpush2.msra.mxu1 %v120_v33 }
  0x3e   :  { %156 = vmatprep.subr.mxu0 %v119_v34  ;;  %257 = vmatprep.subr.mxu1 %v119_v34 }
  0x3f   :  { %157 = vmatpush2.msra.mxu0 %v118_v35  ;;  %289 = vmatpush2.msra.mxu1 %v118_v35 }
  0x40   :  { %158 = vmatprep.subr.mxu0 %v117_v36  ;;  %258 = vmatprep.subr.mxu1 %v117_v36 }
  0x41   :  { %159 = vmatpush2.msra.mxu0 %v116_v37  ;;  %290 = vmatpush2.msra.mxu1 %v116_v37 }
  0x42   :  { %160 = vmatprep.subr.mxu0 %v115_v38  ;;  %259 = vmatprep.subr.mxu1 %v115_v38 }
  0x43   :  { %161 = vmatpush2.msra.mxu0 %v114_v39  ;;  %291 = vmatpush2.msra.mxu1 %v114_v39 }
  0x44   :  { %162 = vmatprep.subr.mxu0 %v113_v40  ;;  %260 = vmatprep.subr.mxu1 %v113_v40 }
  0x45   :  { %163 = vmatpush2.msra.mxu0 %v112_v41  ;;  %292 = vmatpush2.msra.mxu1 %v112_v41 }
  0x46   :  { %164 = vmatprep.subr.mxu0 %v111_v42  ;;  %261 = vmatprep.subr.mxu1 %v111_v42 }
  0x47   :  { %165 = vmatpush2.msra.mxu0 %v110_v43  ;;  %293 = vmatpush2.msra.mxu1 %v110_v43 }
  0x48   :  { %166 = vmatprep.subr.mxu0 %v109_v44  ;;  %262 = vmatprep.subr.mxu1 %v109_v44 }
  0x49   :  { %167 = vmatpush2.msra.mxu0 %v108_v45  ;;  %294 = vmatpush2.msra.mxu1 %v108_v45 }
  0x4a   :  { %168 = vmatprep.subr.mxu0 %v107_v46  ;;  %263 = vmatprep.subr.mxu1 %v107_v46 }
  0x4b   :  { %169 = vmatpush2.msra.mxu0 %v106_v47  ;;  %295 = vmatpush2.msra.mxu1 %v106_v47 }
  0x4c   :  { %170 = vmatprep.subr.mxu0 %v105_v48  ;;  %264 = vmatprep.subr.mxu1 %v105_v48 }
  0x4d   :  { %171 = vmatpush2.msra.mxu0 %v104_v49  ;;  %296 = vmatpush2.msra.mxu1 %v104_v49 }
  0x4e   :  { %172 = vmatprep.subr.mxu0 %v103_v50  ;;  %265 = vmatprep.subr.mxu1 %v103_v50 }
  0x4f   :  { %173 = vmatpush2.msra.mxu0 %v102_v51  ;;  %297 = vmatpush2.msra.mxu1 %v102_v51 }
  0x50   :  { %174 = vmatprep.subr.mxu0 %v101_v52  ;;  %266 = vmatprep.subr.mxu1 %v101_v52 }
  0x51   :  { %175 = vmatpush2.msra.mxu0 %v100_v53  ;;  %298 = vmatpush2.msra.mxu1 %v100_v53 }
  0x52   :  { %176 = vmatprep.subr.mxu0 %v99_v54  ;;  %267 = vmatprep.subr.mxu1 %v99_v54 }
  0x53   :  { %177 = vmatpush2.msra.mxu0 %v98_v55  ;;  %299 = vmatpush2.msra.mxu1 %v98_v55 }
  0x54   :  { %178 = vmatprep.subr.mxu0 %v97_v56  ;;  %268 = vmatprep.subr.mxu1 %v97_v56 }
  0x55   :  { %179 = vmatpush2.msra.mxu0 %v96_v57  ;;  %300 = vmatpush2.msra.mxu1 %v96_v57 }
  0x56   :  { %180 = vmatprep.subr.mxu0 %v95_v58  ;;  %269 = vmatprep.subr.mxu1 %v95_v58 }
  0x57   :  { %181 = vmatpush2.msra.mxu0 %v94_v59  ;;  %301 = vmatpush2.msra.mxu1 %v94_v59 }
  0x58   :  { %182 = vmatprep.subr.mxu0 %v93_v60  ;;  %270 = vmatprep.subr.mxu1 %v93_v60 }
  0x59   :  { %183 = vmatpush2.msra.mxu0 %v92_v61  ;;  %302 = vmatpush2.msra.mxu1 %v92_v61 }
  0x5a   :  { %184 = vmatprep.subr.mxu0 %v91_v62  ;;  %271 = vmatprep.subr.mxu1 %v91_v62 }
  0x5b   :  { %185 = vmatpush2.msra.mxu0 %v90_v63  ;;  %303 = vmatpush2.msra.mxu1 %v90_v63 }
  0x5c   :  { %186 = vmatprep.mubr.f32.mxu0 %v55_v0  ;;  %192 = vmatprep.mubr.f32.mxu1 %v57_v1 }
  0x5d   :  { %187 = vmatmul.mubr.f32.vlgmr.msra.gmra.mxu0 %v54_v2  ;;  %193 = vmatmul.mubr.f32.vlgmr.msra.gmra.mxu1 %v56_v3 }
 0x11d   :  { %v188_v11 = vpop.f32.mrf.mxu0  ;;  %v194_v12 = vpop.f32.mrf.mxu1 }
 0x11e   :  { %v226_v13 = vadd.f32 %v219_v9, %v188_v11  ;;  %v228_v14 = vadd.f32 %v219_v9, %v194_v12 }
 0x11f   :  { %v190_v15 = vpop.f32.mrf.mxu0  ;;  %v196_v16 = vpop.f32.mrf.mxu1 }
 0x120   :  { %230 = vst [vmem:[%s400_s3] sm:$0xff] %v226_v13  ;;  %232 = vst [vmem:[%s400_s3 + $0x10] sm:$0xff] %v228_v14  ;;  %v227_v17 = vadd.f32 %v223_v10, %v190_v15  ;;  %v229_v18 = vadd.f32 %v223_v10, %v196_v16 }
 0x122   :  { %231 = vst [vmem:[%s400_s3 + $0x8] sm:$0xff] %v227_v17  ;;  %233 = vst [vmem:[%s400_s3 + $0x18] sm:$0xff] %v229_v18 }
 0x123   :  { %238 = vsyncpa [#allocation4], 1 }
 0x124   :  { %239 = vsyncpa [#allocation6], 1 }

// kernel: multi_head_attention.9
= control target key start
LH: loop header
LB: loop body
LE: loop exit
PB: predicated region body
PF: predicated region fallthrough
CT: control target
= control target key end

     0   :  { %s545_s0 = inlined_call_operand.vmem [shape: f32[16,256], index: 0, kind: input, shape index: {}]   ;;  %s546_s1 = inlined_call_operand.vmem [shape: f32[256,256], index: 1, kind: input, shape index: {}]   ;;  %s547_s2 = inlined_call_operand.vmem [shape: f32[1,256], index: 2, kind: input, shape index: {}]   ;;  %s548_s3 = inlined_call_operand.hbm [shape: f32[16,256], index: 3, kind: output, shape index: {}]  }
   0x1   :  { %v62_v0 = vld [vmem:[%s546_s1 + $0xf8] sm:$0xff]  ;;  %v61_v1 = vld [vmem:[%s546_s1 + $0xf0] sm:$0xff]  ;;  %v60_v2 = vld [vmem:[%s546_s1 + $0xe8] sm:$0xff] }
   0x2   :  { %95 = vmatprep.subr.mxu0 %v62_v0  ;;  %223 = vmatprep.subr.mxu1 %v62_v0  ;;  %v59_v3 = vld [vmem:[%s546_s1 + $0xe0] sm:$0xff]  ;;  %v58_v4 = vld [vmem:[%s546_s1 + $0xd8] sm:$0xff]  ;;  %v57_v5 = vld [vmem:[%s546_s1 + $0xd0] sm:$0xff] }
   0x3   :  { %96 = vmatpush1.msra.mxu0 %v61_v1  ;;  %255 = vmatpush1.msra.mxu1 %v61_v1  ;;  %v56_v6 = vld [vmem:[%s546_s1 + $0xc8] sm:$0xff]  ;;  %v55_v7 = vld [vmem:[%s546_s1 + $0xc0] sm:$0xff]  ;;  %v54_v8 = vld [vmem:[%s546_s1 + $0xb8] sm:$0xff] }
   0x4   :  { %97 = vmatprep.subr.mxu0 %v60_v2  ;;  %224 = vmatprep.subr.mxu1 %v60_v2  ;;  %v53_v9 = vld [vmem:[%s546_s1 + $0xb0] sm:$0xff]  ;;  %v52_v10 = vld [vmem:[%s546_s1 + $0xa8] sm:$0xff]  ;;  %v51_v11 = vld [vmem:[%s546_s1 + $0xa0] sm:$0xff] }
   0x5   :  { %98 = vmatpush1.msra.mxu0 %v59_v3  ;;  %256 = vmatpush1.msra.mxu1 %v59_v3  ;;  %v50_v12 = vld [vmem:[%s546_s1 + $0x98] sm:$0xff]  ;;  %v49_v13 = vld [vmem:[%s546_s1 + $0x90] sm:$0xff]  ;;  %v48_v14 = vld [vmem:[%s546_s1 + $0x88] sm:$0xff] }
   0x6   :  { %99 = vmatprep.subr.mxu0 %v58_v4  ;;  %225 = vmatprep.subr.mxu1 %v58_v4  ;;  %v47_v15 = vld [vmem:[%s546_s1 + $0x80] sm:$0xff]  ;;  %v46_v16 = vld [vmem:[%s546_s1 + $0x78] sm:$0xff]  ;;  %v45_v17 = vld [vmem:[%s546_s1 + $0x70] sm:$0xff] }
   0x7   :  { %100 = vmatpush1.msra.mxu0 %v57_v5  ;;  %257 = vmatpush1.msra.mxu1 %v57_v5  ;;  %v44_v18 = vld [vmem:[%s546_s1 + $0x68] sm:$0xff]  ;;  %v43_v19 = vld [vmem:[%s546_s1 + $0x60] sm:$0xff]  ;;  %v42_v20 = vld [vmem:[%s546_s1 + $0x58] sm:$0xff] }
   0x8   :  { %101 = vmatprep.subr.mxu0 %v56_v6  ;;  %226 = vmatprep.subr.mxu1 %v56_v6  ;;  %v41_v21 = vld [vmem:[%s546_s1 + $0x50] sm:$0xff]  ;;  %v40_v22 = vld [vmem:[%s546_s1 + $0x48] sm:$0xff]  ;;  %v39_v23 = vld [vmem:[%s546_s1 + $0x40] sm:$0xff] }
   0x9   :  { %102 = vmatpush1.msra.mxu0 %v55_v7  ;;  %258 = vmatpush1.msra.mxu1 %v55_v7  ;;  %v38_v24 = vld [vmem:[%s546_s1 + $0x38] sm:$0xff] }
   0xa   :  { %103 = vmatprep.subr.mxu0 %v54_v8  ;;  %227 = vmatprep.subr.mxu1 %v54_v8 }
   0xb   :  { %104 = vmatpush1.msra.mxu0 %v53_v9  ;;  %259 = vmatpush1.msra.mxu1 %v53_v9 }
   0xc   :  { %105 = vmatprep.subr.mxu0 %v52_v10  ;;  %228 = vmatprep.subr.mxu1 %v52_v10 }
   0xd   :  { %106 = vmatpush1.msra.mxu0 %v51_v11  ;;  %260 = vmatpush1.msra.mxu1 %v51_v11 }
   0xe   :  { %107 = vmatprep.subr.mxu0 %v50_v12  ;;  %229 = vmatprep.subr.mxu1 %v50_v12 }
   0xf   :  { %108 = vmatpush1.msra.mxu0 %v49_v13  ;;  %261 = vmatpush1.msra.mxu1 %v49_v13 }
  0x10   :  { %109 = vmatprep.subr.mxu0 %v48_v14  ;;  %230 = vmatprep.subr.mxu1 %v48_v14 }
  0x11   :  { %110 = vmatpush1.msra.mxu0 %v47_v15  ;;  %262 = vmatpush1.msra.mxu1 %v47_v15 }
  0x12   :  { %111 = vmatprep.subr.mxu0 %v46_v16  ;;  %231 = vmatprep.subr.mxu1 %v46_v16 }
  0x13   :  { %112 = vmatpush1.msra.mxu0 %v45_v17  ;;  %263 = vmatpush1.msra.mxu1 %v45_v17 }
  0x14   :  { %113 = vmatprep.subr.mxu0 %v44_v18  ;;  %232 = vmatprep.subr.mxu1 %v44_v18 }
  0x15   :  { %114 = vmatpush1.msra.mxu0 %v43_v19  ;;  %264 = vmatpush1.msra.mxu1 %v43_v19 }
  0x16   :  { %115 = vmatprep.subr.mxu0 %v42_v20  ;;  %233 = vmatprep.subr.mxu1 %v42_v20 }
  0x17   :  { %116 = vmatpush1.msra.mxu0 %v41_v21  ;;  %265 = vmatpush1.msra.mxu1 %v41_v21 }
  0x18   :  { %8 = vsyncpa [#allocation4], 0  ;;  %117 = vmatprep.subr.mxu0 %v40_v22  ;;  %234 = vmatprep.subr.mxu1 %v40_v22  ;;  %v37_v25 = vld [vmem:[%s546_s1 + $0x30] sm:$0xff]  ;;  %v36_v26 = vld [vmem:[%s546_s1 + $0x28] sm:$0xff]  ;;  %v189_v4 = vlaneseq  ;;  %s312_s14 = smov [#allocation3]  }
  0x19   :  { %118 = vmatpush1.msra.mxu0 %v39_v23  ;;  %266 = vmatpush1.msra.mxu1 %v39_v23  ;;  %v35_v27 = vld [vmem:[%s546_s1 + $0x20] sm:$0xff]  ;;  %v34_v28 = vld [vmem:[%s546_s1 + $0x18] sm:$0xff]  ;;  %v33_v29 = vld [vmem:[%s546_s1 + $0x10] sm:$0xff]  ;;  %s212_s15 = sshll.u32 %s312_s14, 4  ;;  %s213_s15 = int_to_ptr.vmem [resolvable:$true] %s212_s15 }
  0x1a   :  { %119 = vmatprep.subr.mxu0 %v38_v24  ;;  %235 = vmatprep.subr.mxu1 %v38_v24  ;;  %v32_v30 = vld [vmem:[%s546_s1 + $0x8] sm:$0xff]  ;;  %v31_v31 = vld [vmem:[%s546_s1] sm:$0xff]  ;;  %v94_v32 = vld [vmem:[%s546_s1 + $0x1f8] sm:$0xff]  ;;  %v190_v5 = vshrl.u32 %v189_v4, 7  ;;  %p295_p1 = scmp.lt.s32.totalorder %s213_s15, %s213_s15 }
  0x1b   :  { %120 = vmatpush1.msra.mxu0 %v37_v25  ;;  %267 = vmatpush1.msra.mxu1 %v37_v25  ;;  %v93_v33 = vld [vmem:[%s546_s1 + $0x1f0] sm:$0xff]  ;;  %v92_v34 = vld [vmem:[%s546_s1 + $0x1e8] sm:$0xff]  ;;  %v91_v35 = vld [vmem:[%s546_s1 + $0x1e0] sm:$0xff] }
  0x1c   :  { %121 = vmatprep.subr.mxu0 %v36_v26  ;;  %236 = vmatprep.subr.mxu1 %v36_v26  ;;  %v90_v36 = vld [vmem:[%s546_s1 + $0x1d8] sm:$0xff]  ;;  %v89_v37 = vld [vmem:[%s546_s1 + $0x1d0] sm:$0xff]  ;;  %v88_v38 = vld [vmem:[%s546_s1 + $0x1c8] sm:$0xff]  ;;  %v191_v6 = vsub.s32 0, %v190_v5  ;;  %v195_v8 = vsub.s32 1, %v190_v5 }
  0x1d   :  { %122 = vmatpush1.msra.mxu0 %v35_v27  ;;  %268 = vmatpush1.msra.mxu1 %v35_v27  ;;  %v87_v39 = vld [vmem:[%s546_s1 + $0x1c0] sm:$0xff]  ;;  %v86_v40 = vld [vmem:[%s546_s1 + $0x1b8] sm:$0xff]  ;;  %v85_v41 = vld [vmem:[%s546_s1 + $0x1b0] sm:$0xff] }
  0x1e   :  { %123 = vmatprep.subr.mxu0 %v34_v28  ;;  %237 = vmatprep.subr.mxu1 %v34_v28  ;;  %v84_v42 = vld [vmem:[%s546_s1 + $0x1a8] sm:$0xff]  ;;  %v83_v43 = vld [vmem:[%s546_s1 + $0x1a0] sm:$0xff]  ;;  %v82_v44 = vld [vmem:[%s546_s1 + $0x198] sm:$0xff] }
  0x1f   :  { %124 = vmatpush1.msra.mxu0 %v33_v29  ;;  %269 = vmatpush1.msra.mxu1 %v33_v29  ;;  %v81_v45 = vld [vmem:[%s546_s1 + $0x190] sm:$0xff]  ;;  %v80_v46 = vld [vmem:[%s546_s1 + $0x188] sm:$0xff]  ;;  %v79_v47 = vld [vmem:[%s546_s1 + $0x180] sm:$0xff] }
  0x20   :  { %125 = vmatprep.subr.mxu0 %v32_v30  ;;  %238 = vmatprep.subr.mxu1 %v32_v30  ;;  %v78_v48 = vld [vmem:[%s546_s1 + $0x178] sm:$0xff]  ;;  %v77_v49 = vld [vmem:[%s546_s1 + $0x170] sm:$0xff]  ;;  %v76_v50 = vld [vmem:[%s546_s1 + $0x168] sm:$0xff] }
  0x21   :  { %126 = vmatpush1.msra.mxu0 %v31_v31  ;;  %270 = vmatpush1.msra.mxu1 %v31_v31  ;;  %v75_v51 = vld [vmem:[%s546_s1 + $0x160] sm:$0xff]  ;;  %v74_v52 = vld [vmem:[%s546_s1 + $0x158] sm:$0xff]  ;;  %v73_v53 = vld [vmem:[%s546_s1 + $0x150] sm:$0xff] }
  0x22   :  { %127 = vmatprep.subr.mxu0 %v94_v32  ;;  %239 = vmatprep.subr.mxu1 %v94_v32  ;;  %v72_v54 = vld [vmem:[%s546_s1 + $0x148] sm:$0xff]  ;;  %v71_v55 = vld [vmem:[%s546_s1 + $0x140] sm:$0xff]  ;;  %v70_v56 = vld [vmem:[%s546_s1 + $0x138] sm:$0xff] }
  0x23   :  { %128 = vmatpush2.msra.mxu0 %v93_v33  ;;  %271 = vmatpush2.msra.mxu1 %v93_v33  ;;  %v69_v57 = vld [vmem:[%s546_s1 + $0x130] sm:$0xff]  ;;  %v68_v58 = vld [vmem:[%s546_s1 + $0x128] sm:$0xff]  ;;  %v67_v59 = vld [vmem:[%s546_s1 + $0x120] sm:$0xff] }
  0x24   :  { %129 = vmatprep.subr.mxu0 %v92_v34  ;;  %240 = vmatprep.subr.mxu1 %v92_v34  ;;  %v66_v60 = vld [vmem:[%s546_s1 + $0x118] sm:$0xff]  ;;  %v65_v61 = vld [vmem:[%s546_s1 + $0x110] sm:$0xff]  ;;  %v64_v62 = vld [vmem:[%s546_s1 + $0x108] sm:$0xff] }
  0x25   :  { %130 = vmatpush2.msra.mxu0 %v91_v35  ;;  %272 = vmatpush2.msra.mxu1 %v91_v35  ;;  %v63_v63 = vld [vmem:[%s546_s1 + $0x100] sm:$0xff]  ;;  %v28_v0 = vld [vmem:[%s545_s0 + $0x8] sm:$0xff]  ;;  %v30_v1 = vld [vmem:[%s545_s0 + $0x18] sm:$0xff] }
  0x26   :  { %131 = vmatprep.subr.mxu0 %v90_v36  ;;  %241 = vmatprep.subr.mxu1 %v90_v36  ;;  %v27_v2 = vld [vmem:[%s545_s0] sm:$0xff]  ;;  %v29_v3 = vld [vmem:[%s545_s0 + $0x10] sm:$0xff]  ;;  %s290_s0 = scalar_lea.vmem %s213_s15, 512 }
  0x27   :  { %132 = vmatpush2.msra.mxu0 %v89_v37  ;;  %273 = vmatpush2.msra.mxu1 %v89_v37  ;;  %v187_v7 = vld [vmem:[%s547_s2] sm:$0x3]  ;;  %p291_p0 = scmp.ne.s32.totalorder %s213_s15, %s290_s0  ;;  %p296_p2 = scmp.lt.s32.totalorder %s290_s0, %s290_s0 }
  0x28   :  { %133 = vmatprep.subr.mxu0 %v88_v38  ;;  %242 = vmatprep.subr.mxu1 %v88_v38  ;;  %v192_v9 = vrot.slane %v187_v7, %v191_v6  ;;  %v196_v10 = vrot.slane %v187_v7, %v195_v8 }
  0x29   :  { %134 = vmatpush2.msra.mxu0 %v87_v39  ;;  %274 = vmatpush2.msra.mxu1 %v87_v39  ;;  %p297_p3 = por %p296_p2, %p295_p1 }
  0x2a   :  { %135 = vmatprep.subr.mxu0 %v86_v40  ;;  %243 = vmatprep.subr.mxu1 %v86_v40 }
  0x2b   :  { %136 = vmatpush2.msra.mxu0 %v85_v41  ;;  %275 = vmatpush2.msra.mxu1 %v85_v41  ;;  %p298_p4 = pnand %p297_p3, %p291_p0 }
  0x2c   :  { %137 = vmatprep.subr.mxu0 %v84_v42  ;;  %244 = vmatprep.subr.mxu1 %v84_v42 }
  0x2d   :  { %138 = vmatpush2.msra.mxu0 %v83_v43  ;;  %276 = vmatpush2.msra.mxu1 %v83_v43 }
  0x2e   :  { %139 = vmatprep.subr.mxu0 %v82_v44  ;;  %245 = vmatprep.subr.mxu1 %v82_v44 }
  0x2f   :  { %140 = vmatpush2.msra.mxu0 %v81_v45  ;;  %277 = vmatpush2.msra.mxu1 %v81_v45 }
  0x30   :  { %141 = vmatprep.subr.mxu0 %v80_v46  ;;  %246 = vmatprep.subr.mxu1 %v80_v46 }
  0x31   :  { %142 = vmatpush2.msra.mxu0 %v79_v47  ;;  %278 = vmatpush2.msra.mxu1 %v79_v47 }
  0x32   :  { %143 = vmatprep.subr.mxu0 %v78_v48  ;;  %247 = vmatprep.subr.mxu1 %v78_v48 }
  0x33   :  { %144 = vmatpush2.msra.mxu0 %v77_v49  ;;  %279 = vmatpush2.msra.mxu1 %v77_v49 }
  0x34   :  { %145 = vmatprep.subr.mxu0 %v76_v50  ;;  %248 = vmatprep.subr.mxu1 %v76_v50 }
  0x35   :  { %146 = vmatpush2.msra.mxu0 %v75_v51  ;;  %280 = vmatpush2.msra.mxu1 %v75_v51 }
  0x36   :  { %147 = vmatprep.subr.mxu0 %v74_v52  ;;  %249 = vmatprep.subr.mxu1 %v74_v52 }
  0x37   :  { %148 = vmatpush2.msra.mxu0 %v73_v53  ;;  %281 = vmatpush2.msra.mxu1 %v73_v53 }
  0x38   :  { %149 = vmatprep.subr.mxu0 %v72_v54  ;;  %250 = vmatprep.subr.mxu1 %v72_v54 }
  0x39   :  { %150 = vmatpush2.msra.mxu0 %v71_v55  ;;  %282 = vmatpush2.msra.mxu1 %v71_v55 }
  0x3a   :  { %151 = vmatprep.subr.mxu0 %v70_v56  ;;  %251 = vmatprep.subr.mxu1 %v70_v56 }
  0x3b   :  { %152 = vmatpush2.msra.mxu0 %v69_v57  ;;  %283 = vmatpush2.msra.mxu1 %v69_v57 }
  0x3c   :  { %153 = vmatprep.subr.mxu0 %v68_v58  ;;  %252 = vmatprep.subr.mxu1 %v68_v58 }
  0x3d   :  { %154 = vmatpush2.msra.mxu0 %v67_v59  ;;  %284 = vmatpush2.msra.mxu1 %v67_v59 }
  0x3e   :  { %155 = vmatprep.subr.mxu0 %v66_v60  ;;  %253 = vmatprep.subr.mxu1 %v66_v60 }
  0x3f   :  { %156 = vmatpush2.msra.mxu0 %v65_v61  ;;  %285 = vmatpush2.msra.mxu1 %v65_v61 }
  0x40   :  { %157 = vmatprep.subr.mxu0 %v64_v62  ;;  %254 = vmatprep.subr.mxu1 %v64_v62 }
  0x41   :  { %158 = vmatpush2.msra.mxu0 %v63_v63  ;;  %286 = vmatpush2.msra.mxu1 %v63_v63 }
  0x42   :  { %159 = vmatprep.mubr.f32.mxu0 %v28_v0  ;;  %165 = vmatprep.mubr.f32.mxu1 %v30_v1 }
  0x43   :  { %160 = vmatmul.mubr.f32.vlgmr.msra.gmra.mxu0 %v27_v2  ;;  %166 = vmatmul.mubr.f32.vlgmr.msra.gmra.mxu1 %v29_v3 }
 0x103   :  { %v161_v11 = vpop.f32.mrf.mxu0  ;;  %v167_v12 = vpop.f32.mrf.mxu1 }
 0x104   :  { %v199_v13 = vadd.f32 %v192_v9, %v161_v11  ;;  %v201_v14 = vadd.f32 %v192_v9, %v167_v12 }
 0x105   :  { %v163_v15 = vpop.f32.mrf.mxu0  ;;  %v169_v16 = vpop.f32.mrf.mxu1 }
 0x106   :  { %203 = vst [vmem:[#allocation3] sm:$0xff] %v199_v13  ;;  %205 = vst [vmem:[#allocation3 + $0x10] sm:$0xff] %v201_v14  ;;  %v200_v17 = vadd.f32 %v196_v10, %v163_v15  ;;  %v202_v18 = vadd.f32 %v196_v10, %v169_v16 }
 0x108   :  { %204 = vst [vmem:[#allocation3 + $0x8] sm:$0xff] %v200_v17  ;;  %206 = vst [vmem:[#allocation3 + $0x18] sm:$0xff] %v202_v18 }
 0x109   :  { %301 = shalt.err (!%p298_p4)
}
 0x10a   :  { %s313_s2 = smov 256   ;;  %s314_s16 = smov 16  }
 0x10b   :  { %218 = dma.vmem_to_hbm [thread:$0]  %s213_s15, 512, %s548_s3, [#allocation4], %s313_s2, %s313_s2, %s314_s16  }
 0x10c   :  { %310 = dma.done.wait [#allocation4], 512  }
 0x10d   :  { %311 = vsyncadd [#allocation4], 4294966784 }
 0x10e   :  { %222 = vsyncpa [#allocation4], 1 }

// kernel: multi_head_attention.8
= control target key start
LH: loop header
LB: loop body
LE: loop exit
PB: predicated region body
PF: predicated region fallthrough
CT: control target
= control target key end

     0   :  { %s1405_s12 = smov 0   ;;  %s1407_s13 = smov 0   ;;  %s1549_s0 = inlined_call_operand.vmem [shape: f32[2,4,8,64], index: 0, kind: input, shape index: {}]   ;;  %s1550_s1 = inlined_call_operand.vmem [shape: f32[2,4,8,64], index: 1, kind: input, shape index: {}]   ;;  %s1551_s2 = inlined_call_operand.vmem [shape: f32[2,4,8,64], index: 2, kind: input, shape index: {}]   ;;  %s1552_s3 = inlined_call_operand.vmem [shape: f32[2,8,256], index: 3, kind: output, shape index: {}]  }
   0x1   :  { %s1409_s14 = smov 0  }
   0x2 LB: > { %s32_s15 = sadd.s32 1, %s1374_s13  ;;  %p1218_p0 = scmp.ge.s32.totalorder %s1378_s14, 1  ;;  %s1378_s14 = sphi %s1409_s14, %s13_s14   ;;  %s1374_s13 = sphi %s1407_s13, %s1554_s13   ;;  %s1370_s12 = sphi %s1405_s12, %s1553_s12  }
   0x3   : > { %p34_p1 = scmp.ge.s32.totalorder %s32_s15, 2  ;;  %p193_p2 = scmp.lt.s32.totalorder %s1378_s14, 3 }
   0x5   : > { %s1556_s15 = smov (%p34_p1, %s32_s15), 0  ;;  %p194_p3 = pnand %p1218_p0, %p193_p2 }
   0x6   : > { %p240_p4 = scmp.lt.s32.totalorder (!%p194_p3), %s1370_s12, 1  ;;  %s1384_s26 = smov (!%p194_p3), 64  }
   0x7   : > { %197 = sbr.rel (%p194_p3) target bundleno = 904 (0x388), region = 32 }
   0xc   : > { %vm286_vm0 = vcmask 523264   ;;  %v1380_v0 = vmov 0.0   ;;  %vm1381_vm1 = vmmov 0   ;;  %s1558_s12 = smov (!%p240_p4, %s1370_s12), 1  ;;  %vm277_vm2 = vcmask 7168  }
   0xd   : > { %1266 = vmatprep.subr.mxu1 %v1380_v0  ;;  %287 = vst.msk [vmem:[#allocation4] sm:$0xff] %vm286_vm0, %v1380_v0  ;;  %288 = vst.msk [vmem:[#allocation4 + $0x8] sm:$0xff] %vm286_vm0, %v1380_v0  ;;  %1268 = vmatprep.mubr.msk.f32.mxu1 %vm1381_vm1, %v1380_v0  ;;  %s1440_s16 = sshll.u32 %s1558_s12, 5  ;;  %v1382_v9 = vmov -inf   ;;  %vm612_vm3 = vcmask 64512   ;;  %v1383_v22 = vmov 0  }
   0xe   : > { %289 = vst.msk [vmem:[#allocation4 + $0x10] sm:$0xff] %vm286_vm0, %v1380_v0  ;;  %290 = vst.msk [vmem:[#allocation4 + $0x18] sm:$0xff] %vm286_vm0, %v1380_v0  ;;  %1261 = vmatprep.subr.mxu0 %v1380_v0  ;;  %1263 = vmatprep.mubr.msk.f32.mxu0 %vm1381_vm1, %v1380_v0  ;;  %s255_s19 = scalar_lea.vmem %s1550_s1, %s1440_s16  ;;  %s247_s22 = scalar_lea.vmem %s1549_s0, %s1440_s16  ;;  %vm1078_vm4 = vcmask 1048064  }
   0xf   : > { %v296_v1 = vld [vmem:[%s255_s19 + $0x8] sm:$0xff]  ;;  %v295_v3 = vld [vmem:[%s255_s19] sm:$0xff]  ;;  %v298_v4 = vld [vmem:[%s255_s19 + $0x18] sm:$0xff]  ;;  %279 = vst.msk [vmem:[#allocation2 + $0x8] sm:$0xff] %vm277_vm2, %v1382_v9  ;;  %1330 = vset.pattern.permute.xlu0 %v1383_v22  ;;  %1331 = vset.pattern.permute.xlu1 %v1383_v22  ;;  %s1503_s25 = scalar_lea.vmem %s1551_s2, %s1440_s16  ;;  %s1244_s27 = sshll.u32 %s1558_s12, 4 }
  0x10   : > { %1267 = vmatpush3.xpose.msk.msra.mxu1 %vm286_vm0, %v296_v1  ;;  %v292_v2 = vld [vmem:[%s247_s22 + $0x8] sm:$0xff]  ;;  %1262 = vmatpush3.xpose.msk.msra.mxu0 %vm286_vm0, %v295_v3  ;;  %v291_v5 = vld [vmem:[%s247_s22] sm:$0xff]  ;;  %v297_v6 = vld [vmem:[%s255_s19 + $0x10] sm:$0xff]  ;;  %278 = vst.msk [vmem:[#allocation2] sm:$0xff] %vm277_vm2, %v1382_v9  ;;  %s272_s30 = scalar_lea.vmem %s1552_s3, %s1244_s27 }
  0x11   : > { %1276 = vmatprep.subr.mxu1 %v1380_v0  ;;  %1271 = vmatprep.subr.mxu0 %v1380_v0  ;;  %v294_v7 = vld [vmem:[%s247_s22 + $0x18] sm:$0xff]  ;;  %v293_v8 = vld [vmem:[%s247_s22 + $0x10] sm:$0xff]  ;;  %280 = vst.msk [vmem:[#allocation2 + $0x10] sm:$0xff] %vm277_vm2, %v1382_v9  ;;  %281 = vst.msk [vmem:[#allocation2 + $0x18] sm:$0xff] %vm277_vm2, %v1382_v9 }
  0x12   : > { %282 = vst.msk [vmem:[#allocation3] sm:$0xff] %vm277_vm2, %v1380_v0  ;;  %283 = vst.msk [vmem:[#allocation3 + $0x8] sm:$0xff] %vm277_vm2, %v1380_v0  ;;  %v300_v39 = vld [vmem:[%s1503_s25 + $0x8] sm:$0xff]  ;;  %v299_v40 = vld [vmem:[%s1503_s25] sm:$0xff] }
  0x13   : > { %1269 = vmatmul.mubr.msk.f32.vlgmr.msra.gmra.mxu1 %vm286_vm0, %v292_v2  ;;  %1264 = vmatmul.mubr.msk.f32.vlgmr.msra.gmra.mxu0 %vm286_vm0, %v291_v5  ;;  %284 = vst.msk [vmem:[#allocation3 + $0x10] sm:$0xff] %vm277_vm2, %v1380_v0  ;;  %285 = vst.msk [vmem:[#allocation3 + $0x18] sm:$0xff] %vm277_vm2, %v1380_v0  ;;  %v302_v53 = vld [vmem:[%s1503_s25 + $0x18] sm:$0xff]  ;;  %v301_v58 = vld [vmem:[%s1503_s25 + $0x10] sm:$0xff] }
  0x14   : > { %1277 = vmatpush3.xpose.msk.msra.mxu1 %vm286_vm0, %v298_v4  ;;  %1278 = vmatprep.mubr.msk.f32.mxu1 %vm1381_vm1, %v1380_v0 }
  0x15   : > { %1286 = vmatprep.subr.mxu1 %v1380_v0  ;;  %1272 = vmatpush3.xpose.msk.msra.mxu0 %vm286_vm0, %v297_v6 }
  0x16   : > { %1273 = vmatprep.mubr.msk.f32.mxu0 %vm1381_vm1, %v1380_v0  ;;  %1281 = vmatprep.subr.mxu0 %v1380_v0  ;;  %v609_v23 = vld [vmem:[#allocation2 + $0x8] sm:$0xff] }
  0x17   : > { %1279 = vmatmul.mubr.msk.f32.vlgmr.msra.gmra.mxu1 %vm286_vm0, %v294_v7  ;;  %v1486_v25 = vld [vmem:[#allocation2] sm:$0xff] }
  0x18   : > { %1288 = vmatprep.mubr.msk.f32.mxu1 %vm1381_vm1, %v1380_v0  ;;  %1274 = vmatmul.mubr.msk.f32.vlgmr.msra.gmra.mxu0 %vm286_vm0, %v293_v8  ;;  %v611_v27 = vld [vmem:[#allocation2 + $0x18] sm:$0xff]  ;;  %v610_v32 = vld [vmem:[#allocation2 + $0x10] sm:$0xff] }
  0x19   : > { %1283 = vmatprep.mubr.msk.f32.mxu0 %vm1381_vm1, %v1380_v0  ;;  %1287 = vmatpush3.msra.mxu1 %v300_v39  ;;  %v674_v6 = vld [vmem:[#allocation3 + $0x8] sm:$0xff] }
  0x1a   : > { %1296 = vmatprep.subr.mxu1 %v1380_v0  ;;  %1282 = vmatpush3.msra.mxu0 %v299_v40  ;;  %v676_v9 = vld [vmem:[#allocation3 + $0x18] sm:$0xff]  ;;  %v704_v40 = vld [vmem:[#allocation4 + $0x10] sm:$0xff] }
  0x1b   : > { %1291 = vmatprep.subr.mxu0 %v1380_v0 }
  0xd3   : > { %v452_v10 = vpop.f32.mrf.mxu1  ;;  %v376_v13 = vpop.f32.mrf.mxu0 }
  0xd4   : > { %v616_v11 = vsel %vm612_vm3, %v452_v10, -inf  ;;  %v613_v14 = vsel %vm612_vm3, %v376_v13, -inf }
  0xd5   : > { %617 = vmax.xlane.f32.xlu0 %v616_v11  ;;  %v1270_v12 = vpop.f32.mrf.mxu1  ;;  %614 = vmax.xlane.f32.xlu1 %v613_v14  ;;  %v1265_v16 = vpop.f32.mrf.mxu0  ;;  %v673_v14 = vld [vmem:[#allocation3] sm:$0xff] }
  0xd7   : > { %v604_v15 = vpop.f32.mrf.mxu1 }
  0xd8   : > { %v622_v17 = vsel %vm612_vm3, %v604_v15, -inf  ;;  %v528_v19 = vpop.f32.mrf.mxu0 }
  0xd9   : > { %623 = vmax.xlane.f32.xlu0 %v622_v17  ;;  %v1280_v18 = vpop.f32.mrf.mxu1  ;;  %v619_v20 = vsel %vm612_vm3, %v528_v19, -inf }
  0xda   : > { %620 = vmax.xlane.f32.xlu1 %v619_v20  ;;  %v1275_v21 = vpop.f32.mrf.mxu0 }
 0x15e   : > { %v618_v24 = vpop.xlane.xlu0 %617  ;;  %v615_v28 = vpop.xlane.xlu1 %614 }
 0x15f   : > { %v626_v26 = vmax.f32 %v609_v23, %v618_v24  ;;  %v1490_v30 = vmax.f32 %v1486_v25, %v615_v28  ;;  %v705_v28 = vld [vmem:[#allocation4 + $0x18] sm:$0xff] }
 0x161   : > { %v630_v29 = vsub.f32 %v609_v23, %v626_v26  ;;  %1031 = vst.msk [vmem:[#allocation2 + $0x8] sm:$0xff] %vm277_vm2, %v626_v26  ;;  %648 = vperm.xlu0 %1330, %v626_v26   ;;  %v629_v34 = vsub.f32 %v1486_v25, %v1490_v30  ;;  %1030 = vst.msk [vmem:[#allocation2] sm:$0xff] %vm277_vm2, %v1490_v30  ;;  %v703_v25 = vld [vmem:[#allocation4 + $0x8] sm:$0xff] }
 0x162   : > { %v624_v31 = vpop.xlane.xlu0 %623 }
 0x163   : > { %v628_v33 = vmax.f32 %v611_v27, %v624_v31  ;;  %v621_v35 = vpop.xlane.xlu1 %620  ;;  %v635_v60 = vmul.f32 1.442695, %v630_v29 }
 0x164   : > { %v627_v37 = vmax.f32 %v610_v32, %v621_v35 }
 0x165   : > { %v632_v36 = vsub.f32 %v611_v27, %v628_v33  ;;  %1033 = vst.msk [vmem:[#allocation2 + $0x18] sm:$0xff] %vm277_vm2, %v628_v33  ;;  %658 = vperm.xlu1 %1331, %v628_v33  }
 0x166   : > { %v631_v38 = vsub.f32 %v610_v32, %v627_v37  ;;  %1032 = vst.msk [vmem:[#allocation2 + $0x10] sm:$0xff] %vm277_vm2, %v627_v37 }
 0x167   : > { %v639_v62 = vmul.f32 1.442695, %v632_v36 }
 0x168   : > { %v637_v1 = vmul.f32 1.442695, %v631_v38 }
 0x169   : > { %643 = vperm.xlu1 %1331, %v1490_v30  }
 0x16d   : > { %653 = vperm.xlu1 %1331, %v627_v37  }
 0x1dc   : > { %v649_v41 = vpop.permute.xlu0 %648 }
 0x1dd   : > { %v662_v42 = vsub.f32 %v452_v10, %v649_v41 }
 0x1df   : > { %v667_v43 = vmul.f32 1.442695, %v662_v42 }
 0x1e0   : > { %v659_v44 = vpop.permute.xlu1 %658 }
 0x1e1   : > { %1332 = vpow2.f32 %v667_v43  ;;  %v664_v45 = vsub.f32 %v604_v15, %v659_v44 }
 0x1e3   : > { %v671_v46 = vmul.f32 1.442695, %v664_v45 }
 0x1e4   : > { %v644_v47 = vpop.permute.xlu1 %643 }
 0x1e5   : > { %1334 = vpow2.f32 %v671_v46  ;;  %v661_v48 = vsub.f32 %v376_v13, %v644_v47 }
 0x1e7   : > { %v665_v49 = vmul.f32 1.442695, %v661_v48 }
 0x1e8   : > { %v654_v50 = vpop.permute.xlu1 %653 }
 0x1e9   : > { %1336 = vpow2.f32 %v665_v49  ;;  %v663_v51 = vsub.f32 %v528_v19, %v654_v50 }
 0x1eb   : > { %v669_v52 = vmul.f32 1.442695, %v663_v51 }
 0x1ed   : > { %1338 = vpow2.f32 %v669_v52 }
 0x1ee   : > { %v1333_v54 = vpop.eup %1332  ;;  %1340 = vpow2.f32 %v635_v60 }
 0x1ef   : > { %1289 = vmatmul.mubr.msk.f32.vlgmr.msra.gmra.mxu1 %vm612_vm3, %v1333_v54  ;;  %v684_v55 = vsel %vm612_vm3, %v1333_v54, 0.0  ;;  %1342 = vpow2.f32 %v639_v62 }
 0x1f0   : > { %685 = vadd.xlane.f32.xlu1 %v684_v55  ;;  %1297 = vmatpush3.msra.mxu1 %v302_v53  ;;  %1344 = vpow2.f32 %v637_v1 }
 0x1f1   : > { %1298 = vmatprep.mubr.msk.f32.mxu1 %vm1381_vm1, %v1380_v0 }
 0x1f2   : > { %v1335_v56 = vpop.eup %1334 }
 0x1f3   : > { %1299 = vmatmul.mubr.msk.f32.vlgmr.msra.gmra.mxu1 %vm612_vm3, %v1335_v56  ;;  %v690_v57 = vsel %vm612_vm3, %v1335_v56, 0.0 }
 0x1f4   : > { %691 = vadd.xlane.f32.xlu0 %v690_v57  ;;  %v702_v57 = vld [vmem:[#allocation4] sm:$0xff] }
 0x1f6   : > { %v1337_v59 = vpop.eup %1336 }
 0x1f7   : > { %1284 = vmatmul.mubr.msk.f32.vlgmr.msra.gmra.mxu0 %vm612_vm3, %v1337_v59  ;;  %v681_v61 = vsel %vm612_vm3, %v1337_v59, 0.0 }
 0x1f8   : > { %682 = vadd.xlane.f32.xlu1 %v681_v61  ;;  %1292 = vmatpush3.msra.mxu0 %v301_v58 }
 0x1f9   : > { %1293 = vmatprep.mubr.msk.f32.mxu0 %vm1381_vm1, %v1380_v0  ;;  %v633_v0 = vmul.f32 1.442695, %v629_v34  ;;  %v675_v34 = vld [vmem:[#allocation3 + $0x10] sm:$0xff] }
 0x1fa   : > { %v1339_v63 = vpop.eup %1338 }
 0x1fb   : > { %1294 = vmatmul.mubr.msk.f32.vlgmr.msra.gmra.mxu0 %vm612_vm3, %v1339_v63  ;;  %v1341_v2 = vpop.eup %1340  ;;  %v687_v5 = vsel %vm612_vm3, %v1339_v63, 0.0  ;;  %1346 = vpow2.f32 %v633_v0 }
 0x1fc   : > { %v1343_v3 = vpop.eup %1342  ;;  %v678_v7 = vmul.f32 %v1341_v2, %v674_v6 }
 0x1fd   : > { %v1345_v4 = vpop.eup %1344  ;;  %v680_v11 = vmul.f32 %v1343_v3, %v676_v9 }
 0x1fe   : > { %v679_v38 = vmul.f32 %v1345_v4, %v675_v34 }
 0x208   : > { %v1347_v12 = vpop.eup %1346 }
 0x209   : > { %713 = vperm.xlu1 %1331, %v1341_v2   ;;  %v677_v16 = vmul.f32 %v1347_v12, %v673_v14 }
 0x20a   : > { %723 = vperm.xlu0 %1330, %v1343_v3  }
 0x20e   : > { %718 = vperm.xlu0 %1330, %v1345_v4  }
 0x22d   : > { %688 = vadd.xlane.f32.xlu1 %v687_v5 }
 0x279   : > { %v686_v8 = vpop.xlane.xlu1 %685 }
 0x27a   : > { %v694_v10 = vadd.f32 %v686_v8, %v678_v7 }
 0x27c   : > { %699 = vst.msk [vmem:[#allocation3 + $0x8] sm:$0xff] %vm277_vm2, %v694_v10 }
 0x27d   : > { %v692_v13 = vpop.xlane.xlu0 %691 }
 0x27e   : > { %v696_v15 = vadd.f32 %v692_v13, %v680_v11 }
 0x280   : > { %701 = vst.msk [vmem:[#allocation3 + $0x18] sm:$0xff] %vm277_vm2, %v696_v15 }
 0x281   : > { %v683_v17 = vpop.xlane.xlu1 %682 }
 0x282   : > { %v693_v18 = vadd.f32 %v683_v17, %v677_v16 }
 0x283   : > { %v1038_v19 = vld [vmem:[#allocation3 + $0x8] sm:$0xff] }
 0x284   : > { %698 = vst.msk [vmem:[#allocation3] sm:$0xff] %vm277_vm2, %v693_v18  ;;  %1348 = vrcp.f32 %v1038_v19 }
 0x285   : > { %v714_v26 = vpop.permute.xlu1 %713  ;;  %v724_v29 = vpop.permute.xlu0 %723 }
 0x286   : > { %v727_v27 = vmul.f32 %v714_v26, %v703_v25  ;;  %v729_v33 = vmul.f32 %v724_v29, %v705_v28 }
 0x287   : > { %v1040_v20 = vld [vmem:[#allocation3 + $0x18] sm:$0xff] }
 0x288   : > { %1350 = vrcp.f32 %v1040_v20 }
 0x289   : > { %v719_v41 = vpop.permute.xlu0 %718 }
 0x28a   : > { %v728_v45 = vmul.f32 %v719_v41, %v704_v40 }
 0x28b   : > { %v1037_v21 = vld [vmem:[#allocation3] sm:$0xff] }
 0x28c   : > { %1352 = vrcp.f32 %v1037_v21 }
 0x291   : > { %v1349_v22 = vpop.eup %1348 }
 0x292   : > { %1056 = vperm.xlu1 %1331, %v1349_v22  }
 0x295   : > { %v1351_v23 = vpop.eup %1350 }
 0x296   : > { %1066 = vperm.xlu1 %1331, %v1351_v23  }
 0x299   : > { %v1353_v24 = vpop.eup %1352 }
 0x29a   : > { %708 = vperm.xlu1 %1331, %v1347_v12  }
 0x29e   : > { %1051 = vperm.xlu1 %1331, %v1353_v24  }
 0x2af   : > { %v872_v30 = vpop.f32.mrf.mxu1 }
 0x2b0   : > { %v1023_v31 = vadd.f32 %v872_v30, %v727_v27 }
 0x2b1   : > { %v1290_v32 = vpop.f32.mrf.mxu1 }
 0x2b2   : > { %1027 = vst.msk [vmem:[#allocation4 + $0x8] sm:$0xff] %vm286_vm0, %v1023_v31 }
 0x2b3   : > { %v1018_v35 = vpop.f32.mrf.mxu1 }
 0x2b4   : > { %v1025_v36 = vadd.f32 %v1018_v35, %v729_v33 }
 0x2b5   : > { %v1300_v37 = vpop.f32.mrf.mxu1 }
 0x2b6   : > { %1029 = vst.msk [vmem:[#allocation4 + $0x18] sm:$0xff] %vm286_vm0, %v1025_v36  ;;  %v689_v39 = vpop.xlane.xlu1 %688 }
 0x2b7   : > { %v695_v42 = vadd.f32 %v689_v39, %v679_v38  ;;  %v799_v43 = vpop.f32.mrf.mxu0 }
 0x2b9   : > { %700 = vst.msk [vmem:[#allocation3 + $0x10] sm:$0xff] %vm277_vm2, %v695_v42  ;;  %v1285_v44 = vpop.f32.mrf.mxu0  ;;  %v1046_v51 = vld [vmem:[#allocation4 + $0x8] sm:$0xff] }
 0x2bb   : > { %v945_v46 = vpop.f32.mrf.mxu0 }
 0x2bc   : > { %v1024_v47 = vadd.f32 %v945_v46, %v728_v45 }
 0x2bd   : > { %v1295_v48 = vpop.f32.mrf.mxu0  ;;  %v1048_v54 = vld [vmem:[#allocation4 + $0x18] sm:$0xff] }
 0x2be   : > { %1028 = vst.msk [vmem:[#allocation4 + $0x10] sm:$0xff] %vm286_vm0, %v1024_v47 }
 0x2c0   : > { %v1039_v49 = vld [vmem:[#allocation3 + $0x10] sm:$0xff] }
 0x2c1   : > { %1354 = vrcp.f32 %v1039_v49 }
 0x2c5   : > { %v1047_v2 = vld [vmem:[#allocation4 + $0x10] sm:$0xff] }
 0x2ce   : > { %v1355_v50 = vpop.eup %1354 }
 0x2cf   : > { %1061 = vperm.xlu0 %1330, %v1355_v50  }
 0x30d   : > { %v1057_v52 = vpop.permute.xlu1 %1056 }
 0x30e   : > { %v1070_v53 = vmul.f32 %v1057_v52, %v1046_v51 }
 0x310   : > { %1075 = vrot.lane.b32.xlu1 %v1070_v53, %s1384_s26 }
 0x311   : > { %v1067_v55 = vpop.permute.xlu1 %1066 }
 0x312   : > { %v1072_v56 = vmul.f32 %v1067_v55, %v1048_v54 }
 0x314   : > { %1082 = vrot.lane.b32.xlu0 %v1072_v56, %s1384_s26 }
 0x315   : > { %v709_v58 = vpop.permute.xlu1 %708 }
 0x316   : > { %v726_v59 = vmul.f32 %v709_v58, %v702_v57 }
 0x318   : > { %v1022_v60 = vadd.f32 %v799_v43, %v726_v59 }
 0x319   : > { %v1052_v61 = vpop.permute.xlu1 %1051 }
 0x31a   : > { %1026 = vst.msk [vmem:[#allocation4] sm:$0xff] %vm286_vm0, %v1022_v60 }
 0x321   : > { %v1045_v62 = vld [vmem:[#allocation4] sm:$0xff] }
 0x322   : > { %v1069_v63 = vmul.f32 %v1052_v61, %v1045_v62 }
 0x324   : > { %1073 = vst.msk [vmem:[%s272_s30] sm:$0xff] %vm286_vm0, %v1069_v63 }
 0x34a   : > { %v1062_v1 = vpop.permute.xlu0 %1061 }
 0x34b   : > { %v1071_v3 = vmul.f32 %v1062_v1, %v1047_v2 }
 0x34d   : > { %1080 = vst.msk [vmem:[%s272_s30 + $0x8] sm:$0xff] %vm286_vm0, %v1071_v3 }
 0x382   : > { %v1076_v4 = vpop.permute.xlu1 %1075 }
 0x383   : > { %1079 = vst.msk [vmem:[%s272_s30] sm:$0xff] %vm1078_vm4, %v1076_v4 }
 0x386   : > { %v1083_v5 = vpop.permute.xlu0 %1082 }
 0x387   : > { %1085 = vst.msk [vmem:[%s272_s30 + $0x8] sm:$0xff] %vm1078_vm4, %v1083_v5 }
 0x388 PF: > { %s13_s14 = sadd.s32 1, %s1378_s14   ;;  %s1553_s12 = smov %s1374_s13 }
 0x389   : > { %p10_p5 = scmp.ge.s32.totalorder %s13_s14, 4   ;;  %s1554_s13 = smov %s1556_s15 }
 0x38b   :  { %12 = sbr.rel (!%p10_p5) target bundleno = 2 (0x2), region = 76 }

</bundles_post_ra>
